<compile_context>
chip_gen: v7x
topology: tpu7x:2x2x1
jax: 0.10.0
libtpu: 0.0.40
codegen_flags: <defaults>
</compile_context>

<pallas_src>
import math
import numpy as np
import jax
import jax.numpy as jnp
from jax import lax
from jax.experimental import pallas as pl
from jax.experimental.pallas import tpu as pltpu

# ---------------- configuration (small, consistent with the module) ---------
DIM = 32            # channels C
H = W = 8           # input_resolution
NUM_HEADS = 4
WINDOW = 4          # window_size
SHIFT = 2           # shift_size (SW-MSA)
MLP_RATIO = 4.0
B = 2               # batch

HEAD_DIM = DIM // NUM_HEADS
N_TOK = WINDOW * WINDOW                  # tokens per window (M^2)
N_WIN = (H // WINDOW) * (W // WINDOW)    # windows per batch element
L_TOK = N_WIN * N_TOK                    # tokens per batch element (= H*W)
HIDDEN = int(DIM * MLP_RATIO)
SCALE = HEAD_DIM ** (-0.5)
EPS = 1e-5
INV_SQRT2 = 1.0 / math.sqrt(2.0)
NEG_INF = -1e9
QKV_W = 2 * DIM + NUM_HEADS * DIM        # [Q*scale | K | Vp_0 .. Vp_{nH-1}] = 192


# ---------------- helpers (glue, plain JAX / numpy) --------------------------
def window_partition(x, ws):
    b, h, w, c = x.shape
    x = x.reshape(b, h // ws, ws, w // ws, ws, c)
    x = x.transpose(0, 1, 3, 2, 4, 5)
    return x.reshape(-1, ws, ws, c)


def window_reverse(windows, ws, h, w):
    b = windows.shape[0] // ((h * w) // ws // ws)
    x = windows.reshape(b, h // ws, w // ws, ws, ws, -1)
    x = x.transpose(0, 1, 3, 2, 4, 5)
    return x.reshape(b, h, w, -1)


def _erf(x):
    # Abramowitz & Stegun 7.1.26, max abs err ~1.5e-7 (float32-accurate).
    # TODO(synk): exact lax.erf may not lower in Mosaic; using f32-accurate polynomial.
    a1, a2, a3, a4, a5 = 0.254829592, -0.284496736, 1.421413741, -1.453152027, 1.061405429
    p = 0.3275911
    ax = jnp.abs(x)
    t = 1.0 / (1.0 + p * ax)
    y = 1.0 - (((((a5 * t + a4) * t + a3) * t + a2) * t + a1) * t) * jnp.exp(-ax * ax)
    return jnp.where(x >= 0, y, -y)


# ---------------- the fused Pallas kernel ------------------------------------
def swin_kernel(x_ref, g1_ref, be1_ref, wqkv_ref, bqkv_ref, bproj_ref,
                bias_ref, g2_ref, be2_ref, w1_ref, b1m_ref, w2_ref, b2m_ref,
                o_ref):
    # x_ref: (1, L_TOK, C) tokens of one batch element, in window-token order.
    x = x_ref[0]                                               # (L, C)  (also the shortcut)

    # ---- LayerNorm1 (single pass: E[x], E[x^2]) ----
    mu = jnp.mean(x, axis=-1, keepdims=True)
    ex2 = jnp.mean(x * x, axis=-1, keepdims=True)
    xn = (x - mu) * lax.rsqrt(ex2 - mu * mu + EPS) * g1_ref[0] + be1_ref[0]

    # ---- fused QKVp projection --------------------------------------------
    # Columns: [Q*scale (C) | K (C) | Vp_0 (C) | ... | Vp_{nH-1} (C)] where
    # Vp_h = V_h @ Wproj_h was folded into the weight host-side, so the
    # per-head PV matmul directly yields the projected (L, C) contribution.
    qkv = jnp.dot(xn, wqkv_ref[...], preferred_element_type=jnp.float32) + bqkv_ref[0]

    # ---- multi-head attention over the whole 64-token slab -----------------
    # bias_ref[h] is block-diagonal: rel-pos bias (+ shift mask) on in-window
    # entries, -1e9 on cross-window entries -> full-row softmax == per-window.
    acc = jnp.zeros((L_TOK, DIM), jnp.float32)
    for h in range(NUM_HEADS):
        qh = qkv[:, h * HEAD_DIM:(h + 1) * HEAD_DIM]                      # (L, hd), pre-scaled
        kh = qkv[:, DIM + h * HEAD_DIM:DIM + (h + 1) * HEAD_DIM]          # (L, hd)
        vph = qkv[:, 2 * DIM + h * DIM:2 * DIM + (h + 1) * DIM]           # (L, C) projected V
        s = jnp.dot(qh, kh.T, preferred_element_type=jnp.float32) + bias_ref[h]  # (L, L)
        s = s - jnp.max(s, axis=-1, keepdims=True)
        p = jnp.exp(s)
        p = p * pl.reciprocal(jnp.sum(p, axis=-1, keepdims=True), approx=True)
        acc = acc + jnp.dot(p, vph, preferred_element_type=jnp.float32)   # (L, C)

    # ---- first residual (proj bias folded here) ----
    x1 = x + acc + bproj_ref[0]

    # ---- LayerNorm2 ----
    mu2 = jnp.mean(x1, axis=-1, keepdims=True)
    ex22 = jnp.mean(x1 * x1, axis=-1, keepdims=True)
    x2 = (x1 - mu2) * lax.rsqrt(ex22 - mu2 * mu2 + EPS) * g2_ref[0] + be2_ref[0]

    # ---- MLP: FC1 -> exact GELU -> FC2 ----
    hmid = jnp.dot(x2, w1_ref[...], preferred_element_type=jnp.float32) + b1m_ref[0]
    hmid = 0.5 * hmid * (1.0 + _erf(hmid * INV_SQRT2))
    y = jnp.dot(hmid, w2_ref[...], preferred_element_type=jnp.float32) + b2m_ref[0]

    # ---- second residual ----
    o_ref[0] = (x1 + y).astype(o_ref.dtype)


# ---------------- pallas_call wrapper ----------------------------------------
def _full_spec(shape):
    return pl.BlockSpec(shape, lambda b, _s=shape: (0,) * len(_s))


def run_swin_block(xw, fp):
    """xw: (B, L_TOK, C) tokens in window order; fp: folded parameter dict."""
    return pl.pallas_call(
        swin_kernel,
        out_shape=jax.ShapeDtypeStruct((B, L_TOK, DIM), jnp.float32),
        grid=(B,),
        in_specs=[
            pl.BlockSpec((1, L_TOK, DIM), lambda b: (b, 0, 0)),
            _full_spec((1, DIM)), _full_spec((1, DIM)),                    # g1, beta1
            _full_spec((DIM, QKV_W)), _full_spec((1, QKV_W)),              # fused W/b (scaled Q, folded Vproj)
            _full_spec((1, DIM)),                                          # proj bias
            _full_spec((NUM_HEADS, L_TOK, L_TOK)),                         # block-diag bias (grid-resident)
            _full_spec((1, DIM)), _full_spec((1, DIM)),                    # g2, beta2
            _full_spec((DIM, HIDDEN)), _full_spec((1, HIDDEN)),            # W1, b1
            _full_spec((HIDDEN, DIM)), _full_spec((1, DIM)),               # W2, b2
        ],
        out_specs=pl.BlockSpec((1, L_TOK, DIM), lambda b: (b, 0, 0)),
        compiler_params=pltpu.CompilerParams(dimension_semantics=("parallel",)),
    )(xw, fp["g1"], fp["beta1"], fp["wqkvp"], fp["bqkvp"], fp["bproj"],
      fp["bias_bd"], fp["g2"], fp["beta2"], fp["w1_t"], fp["b1"],
      fp["w2_t"], fp["b2"])


def swin_block_forward(x, fp):
    """x: (B, L, C) with L = H*W.  Matches SwinTransformerBlock.forward."""
    b, L, c = x.shape
    # norm1 and all residual / MLP ops are per-token, so they commute with the
    # roll + window permutation: permute the raw input once, run the fused
    # kernel entirely in window-token order, and un-permute the final output.
    xs = x.reshape(b, H, W, c)
    if SHIFT > 0:
        xs = jnp.roll(xs, shift=(-SHIFT, -SHIFT), axis=(1, 2))
    xw = window_partition(xs, WINDOW).reshape(b, L_TOK, c)      # (B, L, C) window order

    ow = run_swin_block(xw, fp)                                 # (B, L, C) window order

    ow = ow.reshape(b * N_WIN, WINDOW, WINDOW, c)
    xs = window_reverse(ow, WINDOW, H, W)
    if SHIFT > 0:
        xs = jnp.roll(xs, shift=(SHIFT, SHIFT), axis=(1, 2))
    return xs.reshape(b, L, c)


# ---------------- parameter / buffer construction ----------------------------
def build_params(key):
    ks = jax.random.split(key, 10)
    p = dict(
        g1=jnp.ones((1, DIM), jnp.float32),
        beta1=jnp.zeros((1, DIM), jnp.float32),
        wqkv_t=(jax.random.normal(ks[0], (DIM, 3 * DIM), jnp.float32) * 0.02),
        bqkv=(jax.random.normal(ks[5], (1, 3 * DIM), jnp.float32) * 0.02),
        wproj_t=(jax.random.normal(ks[1], (DIM, DIM), jnp.float32) * 0.02),
        bproj=(jax.random.normal(ks[6], (1, DIM), jnp.float32) * 0.02),
        g2=jnp.ones((1, DIM), jnp.float32),
        beta2=jnp.zeros((1, DIM), jnp.float32),
        w1_t=(jax.random.normal(ks[2], (DIM, HIDDEN), jnp.float32) * 0.02),
        b1=(jax.random.normal(ks[7], (1, HIDDEN), jnp.float32) * 0.02),
        w2_t=(jax.random.normal(ks[3], (HIDDEN, DIM), jnp.float32) * 0.02),
        b2=(jax.random.normal(ks[8], (1, DIM), jnp.float32) * 0.02),
        rel_table=(jax.random.normal(ks[4], ((2 * WINDOW - 1) ** 2, NUM_HEADS),
                                     jnp.float32) * 0.02),
    )
    return p


def build_fused_params(p, bias_bd):
    """Host-side weight folding: qk scale into Q columns, Wproj into per-head V."""
    wqkv = p["wqkv_t"]                     # (C, 3C), columns [q | k | v]
    bqkv = p["bqkv"][0]                    # (3C,)
    wproj = p["wproj_t"]                   # (C, C)
    wq = wqkv[:, :DIM] * SCALE
    bq = bqkv[:DIM] * SCALE
    wk = wqkv[:, DIM:2 * DIM]
    bk = bqkv[DIM:2 * DIM]
    wv = wqkv[:, 2 * DIM:]
    bv = bqkv[2 * DIM:]
    wvp, bvp = [], []
    for h in range(NUM_HEADS):
        wproj_h = wproj[h * HEAD_DIM:(h + 1) * HEAD_DIM, :]           # (hd, C)
        wvp.append(wv[:, h * HEAD_DIM:(h + 1) * HEAD_DIM] @ wproj_h)  # (C, C)
        bvp.append(bv[h * HEAD_DIM:(h + 1) * HEAD_DIM] @ wproj_h)     # (C,)
    wqkvp = jnp.concatenate([wq, wk] + wvp, axis=1)                   # (C, QKV_W)
    bqkvp = jnp.concatenate([bq, bk] + bvp, axis=0)[None, :]          # (1, QKV_W)
    return dict(
        g1=p["g1"], beta1=p["beta1"], wqkvp=wqkvp, bqkvp=bqkvp, bproj=p["bproj"],
        bias_bd=bias_bd, g2=p["g2"], beta2=p["beta2"],
        w1_t=p["w1_t"], b1=p["b1"], w2_t=p["w2_t"], b2=p["b2"],
    )


def build_relative_position_bias(rel_table):
    ch = np.arange(WINDOW)
    cw = np.arange(WINDOW)
    coords = np.stack(np.meshgrid(ch, cw, indexing="ij"))             # (2, ws, ws)
    coords_flatten = coords.reshape(2, -1)                            # (2, N)
    rel = coords_flatten[:, :, None] - coords_flatten[:, None, :]     # (2, N, N)
    rel = rel.transpose(1, 2, 0).astype(np.int64)
    rel[:, :, 0] += WINDOW - 1
    rel[:, :, 1] += WINDOW - 1
    rel[:, :, 0] *= 2 * WINDOW - 1
    rpi = rel.sum(-1)                                                 # (N, N)
    bias = rel_table[jnp.asarray(rpi.reshape(-1))]                    # (N*N, nH)
    bias = bias.reshape(N_TOK, N_TOK, NUM_HEADS).transpose(2, 0, 1)   # (nH, N, N)
    return bias


def build_attn_mask():
    if SHIFT <= 0:
        return None
    img_mask = np.zeros((1, H, W, 1), np.float32)
    slices = (slice(0, -WINDOW), slice(-WINDOW, -SHIFT), slice(-SHIFT, None))
    cnt = 0
    for hs in slices:
        for ws_ in slices:
            img_mask[:, hs, ws_, :] = cnt
            cnt += 1
    mw = np.asarray(window_partition(jnp.asarray(img_mask), WINDOW))  # (nW, ws, ws, 1)
    mw = mw.reshape(-1, N_TOK)
    am = mw[:, None, :] - mw[:, :, None]                              # (nW, N, N)
    am = np.where(am != 0, -100.0, 0.0).astype(np.float32)
    return jnp.asarray(am)


def build_blockdiag_bias(rel_bias, attn_mask):
    """(nH, L, L) bias: per-window rel-pos bias (+ shift mask) on the diagonal
    blocks, -1e9 elsewhere, so the full-slab softmax == per-window softmax."""
    bias = np.full((NUM_HEADS, L_TOK, L_TOK), NEG_INF, np.float32)
    rb = np.asarray(rel_bias)                                          # (nH, N, N)
    if attn_mask is not None:
        am = np.asarray(attn_mask)                                     # (nW, N, N)
    else:
        am = np.zeros((N_WIN, N_TOK, N_TOK), np.float32)
    for w in range(N_WIN):
        s = w * N_TOK
        bias[:, s:s + N_TOK, s:s + N_TOK] = rb + am[w][None]
    return jnp.asarray(bias)


# ---------------- pure-JAX reference (mirrors the PyTorch forward) -----------
def reference_forward(x, params, rel_bias, attn_mask):
    def ln(z, g, bb):
        mu = z.mean(-1, keepdims=True)
        var = ((z - mu) ** 2).mean(-1, keepdims=True)
        return (z - mu) / jnp.sqrt(var + EPS) * g[0] + bb[0]

    b, L, c = x.shape
    shortcut = x
    xs = ln(x, params["g1"], params["beta1"]).reshape(b, H, W, c)
    if SHIFT > 0:
        xs = jnp.roll(xs, shift=(-SHIFT, -SHIFT), axis=(1, 2))
    xw = window_partition(xs, WINDOW).reshape(-1, N_TOK, c)
    qkv = xw @ params["wqkv_t"] + params["bqkv"][0]
    q = qkv[..., :c].reshape(-1, N_TOK, NUM_HEADS, HEAD_DIM).transpose(0, 2, 1, 3)
    k = qkv[..., c:2 * c].reshape(-1, N_TOK, NUM_HEADS, HEAD_DIM).transpose(0, 2, 1, 3)
    v = qkv[..., 2 * c:].reshape(-1, N_TOK, NUM_HEADS, HEAD_DIM).transpose(0, 2, 1, 3)
    attn = (q * SCALE) @ jnp.swapaxes(k, -1, -2) + rel_bias[None]
    if attn_mask is not None:
        nw = attn_mask.shape[0]
        attn = attn.reshape(-1, nw, NUM_HEADS, N_TOK, N_TOK) + attn_mask[None, :, None]
        attn = attn.reshape(-1, NUM_HEADS, N_TOK, N_TOK)
    attn = jax.nn.softmax(attn, axis=-1)
    o = (attn @ v).transpose(0, 2, 1, 3).reshape(-1, N_TOK, c)
    o = o @ params["wproj_t"] + params["bproj"][0]
    xs = window_reverse(o.reshape(-1, WINDOW, WINDOW, c), WINDOW, H, W)
    if SHIFT > 0:
        xs = jnp.roll(xs, shift=(SHIFT, SHIFT), axis=(1, 2))
    x1 = shortcut + xs.reshape(b, L, c)
    hmid = ln(x1, params["g2"], params["beta2"]) @ params["w1_t"] + params["b1"][0]
    hmid = 0.5 * hmid * (1.0 + jax.scipy.special.erf(hmid * INV_SQRT2))
    return x1 + (hmid @ params["w2_t"] + params["b2"][0])


# ---------------- main --------------------------------------------------------
if __name__ == "__main__":
    key = jax.random.PRNGKey(0)
    params = build_params(key)
    rel_bias = build_relative_position_bias(params["rel_table"])
    attn_mask = build_attn_mask()
    bias_bd = build_blockdiag_bias(rel_bias, attn_mask)
    fused = build_fused_params(params, bias_bd)

    x = jax.random.normal(jax.random.PRNGKey(0), (B, H * W, DIM), jnp.float32)

    fwd = jax.jit(lambda xx: swin_block_forward(xx, fused))
    out = fwd(x)
    out = jax.block_until_ready(out)
    assert out.shape == (B, H * W, DIM)

    ref = reference_forward(x, params, rel_bias, attn_mask)
    np.testing.assert_allclose(np.asarray(out), np.asarray(ref), rtol=2e-2, atol=2e-3)

    print("KERNEL_OK")
</pallas_src>

<mosaic_0001>
module attributes {stable_mosaic.version = 11 : i64} {
  func.func @swin_kernel(%arg0: i32, %arg1: memref<1x64x32xf32, #tpu.memory_space<vmem>>, %arg2: memref<1x32xf32, #tpu.memory_space<vmem>>, %arg3: memref<1x32xf32, #tpu.memory_space<vmem>>, %arg4: memref<32x192xf32, #tpu.memory_space<vmem>>, %arg5: memref<1x192xf32, #tpu.memory_space<vmem>>, %arg6: memref<1x32xf32, #tpu.memory_space<vmem>>, %arg7: memref<4x64x64xf32, #tpu.memory_space<vmem>>, %arg8: memref<1x32xf32, #tpu.memory_space<vmem>>, %arg9: memref<1x32xf32, #tpu.memory_space<vmem>>, %arg10: memref<32x128xf32, #tpu.memory_space<vmem>>, %arg11: memref<1x128xf32, #tpu.memory_space<vmem>>, %arg12: memref<128x32xf32, #tpu.memory_space<vmem>>, %arg13: memref<1x32xf32, #tpu.memory_space<vmem>>, %arg14: memref<1x64x32xf32, #tpu.memory_space<vmem>>) attributes {dimension_semantics = [#tpu.dimension_semantics<parallel>], iteration_bounds = array<i64: 2>, scalar_prefetch = 0 : i64, scratch_operands = 0 : i64, tpu.core_type = #tpu.core_type<tc>, window_params = [{transform_indices = @transform_0, window_bounds = array<i64: 1, 64, 32>}, {pipeline_mode = #tpu.pipeline_mode<synchronous>, transform_indices = @transform_1, window_bounds = array<i64: 1, 32>}, {pipeline_mode = #tpu.pipeline_mode<synchronous>, transform_indices = @transform_2, window_bounds = array<i64: 1, 32>}, {pipeline_mode = #tpu.pipeline_mode<synchronous>, transform_indices = @transform_3, window_bounds = array<i64: 32, 192>}, {pipeline_mode = #tpu.pipeline_mode<synchronous>, transform_indices = @transform_4, window_bounds = array<i64: 1, 192>}, {pipeline_mode = #tpu.pipeline_mode<synchronous>, transform_indices = @transform_5, window_bounds = array<i64: 1, 32>}, {pipeline_mode = #tpu.pipeline_mode<synchronous>, transform_indices = @transform_6, window_bounds = array<i64: 4, 64, 64>}, {pipeline_mode = #tpu.pipeline_mode<synchronous>, transform_indices = @transform_7, window_bounds = array<i64: 1, 32>}, {pipeline_mode = #tpu.pipeline_mode<synchronous>, transform_indices = @transform_8, window_bounds = array<i64: 1, 32>}, {pipeline_mode = #tpu.pipeline_mode<synchronous>, transform_indices = @transform_9, window_bounds = array<i64: 32, 128>}, {pipeline_mode = #tpu.pipeline_mode<synchronous>, transform_indices = @transform_10, window_bounds = array<i64: 1, 128>}, {pipeline_mode = #tpu.pipeline_mode<synchronous>, transform_indices = @transform_11, window_bounds = array<i64: 128, 32>}, {pipeline_mode = #tpu.pipeline_mode<synchronous>, transform_indices = @transform_12, window_bounds = array<i64: 1, 32>}, {transform_indices = @transform_13, window_bounds = array<i64: 1, 64, 32>}]} {
    %c0 = arith.constant 0 : index
    %c0_0 = arith.constant 0 : index
    %c0_1 = arith.constant 0 : index
    %0 = vector.load %arg1[%c0, %c0_0, %c0_1] : memref<1x64x32xf32, #tpu.memory_space<vmem>>, vector<1x64x32xf32>
    %1 = vector.shape_cast %0 : vector<1x64x32xf32> to vector<64x32xf32>
    %cst = arith.constant dense<0.000000e+00> : vector<64xf32>
    %2 = vector.multi_reduction <add>, %1, %cst [1] : vector<64x32xf32> to vector<64xf32>
    %3 = vector.shape_cast %2 : vector<64xf32> to vector<64x1xf32>
    %cst_2 = arith.constant 3.200000e+01 : f32
    %4 = vector.broadcast %cst_2 : f32 to vector<64x1xf32>
    %5 = arith.divf %3, %4 : vector<64x1xf32>
    %6 = arith.mulf %1, %1 : vector<64x32xf32>
    %cst_3 = arith.constant dense<0.000000e+00> : vector<64xf32>
    %7 = vector.multi_reduction <add>, %6, %cst_3 [1] : vector<64x32xf32> to vector<64xf32>
    %8 = vector.shape_cast %7 : vector<64xf32> to vector<64x1xf32>
    %cst_4 = arith.constant 3.200000e+01 : f32
    %9 = vector.broadcast %cst_4 : f32 to vector<64x1xf32>
    %10 = arith.divf %8, %9 : vector<64x1xf32>
    %11 = vector.broadcast %5 : vector<64x1xf32> to vector<64x32xf32>
    %12 = arith.subf %1, %11 : vector<64x32xf32>
    %13 = arith.mulf %5, %5 : vector<64x1xf32>
    %14 = arith.subf %10, %13 : vector<64x1xf32>
    %cst_5 = arith.constant 9.99999974E-6 : f32
    %15 = vector.broadcast %cst_5 : f32 to vector<64x1xf32>
    %16 = arith.addf %14, %15 : vector<64x1xf32>
    %17 = math.rsqrt %16 : vector<64x1xf32>
    %18 = vector.broadcast %17 : vector<64x1xf32> to vector<64x32xf32>
    %19 = arith.mulf %12, %18 : vector<64x32xf32>
    %c0_6 = arith.constant 0 : index
    %c0_7 = arith.constant 0 : index
    %20 = vector.load %arg2[%c0_6, %c0_7] : memref<1x32xf32, #tpu.memory_space<vmem>>, vector<1x32xf32>
    %21 = vector.shape_cast %20 : vector<1x32xf32> to vector<32xf32>
    %22 = vector.shape_cast %21 : vector<32xf32> to vector<1x32xf32>
    %23 = vector.broadcast %22 : vector<1x32xf32> to vector<64x32xf32>
    %24 = arith.mulf %19, %23 : vector<64x32xf32>
    %c0_8 = arith.constant 0 : index
    %c0_9 = arith.constant 0 : index
    %25 = vector.load %arg3[%c0_8, %c0_9] : memref<1x32xf32, #tpu.memory_space<vmem>>, vector<1x32xf32>
    %26 = vector.shape_cast %25 : vector<1x32xf32> to vector<32xf32>
    %27 = vector.shape_cast %26 : vector<32xf32> to vector<1x32xf32>
    %28 = vector.broadcast %27 : vector<1x32xf32> to vector<64x32xf32>
    %29 = arith.addf %24, %28 : vector<64x32xf32>
    %c0_10 = arith.constant 0 : index
    %c0_11 = arith.constant 0 : index
    %30 = vector.load %arg4[%c0_10, %c0_11] : memref<32x192xf32, #tpu.memory_space<vmem>>, vector<32x192xf32>
    %cst_12 = arith.constant dense<0.000000e+00> : vector<64x192xf32>
    %31 = tpu.matmul %29, %30, %cst_12 {dimension_numbers = #tpu.dot_dimension_numbers<[1], [0], [0], [1], [0, 0, 1, 1], [], []>} : vector<64x32xf32>, vector<32x192xf32>, vector<64x192xf32> -> vector<64x192xf32>
    %c0_13 = arith.constant 0 : index
    %c0_14 = arith.constant 0 : index
    %32 = vector.load %arg5[%c0_13, %c0_14] : memref<1x192xf32, #tpu.memory_space<vmem>>, vector<1x192xf32>
    %33 = vector.shape_cast %32 : vector<1x192xf32> to vector<192xf32>
    %34 = vector.shape_cast %33 : vector<192xf32> to vector<1x192xf32>
    %35 = vector.broadcast %34 : vector<1x192xf32> to vector<64x192xf32>
    %36 = arith.addf %31, %35 : vector<64x192xf32>
    %cst_15 = arith.constant 0.000000e+00 : f32
    %37 = vector.broadcast %cst_15 : f32 to vector<64x32xf32>
    %38 = vector.extract_strided_slice %36 {offsets = [0, 0], sizes = [64, 8], strides = [1, 1]} : vector<64x192xf32> to vector<64x8xf32>
    %39 = vector.extract_strided_slice %36 {offsets = [0, 32], sizes = [64, 8], strides = [1, 1]} : vector<64x192xf32> to vector<64x8xf32>
    %40 = vector.extract_strided_slice %36 {offsets = [0, 64], sizes = [64, 32], strides = [1, 1]} : vector<64x192xf32> to vector<64x32xf32>
    %41 = tpu.transpose %39, [1, 0] : vector<64x8xf32> -> vector<8x64xf32>
    %cst_16 = arith.constant dense<0.000000e+00> : vector<64x64xf32>
    %42 = tpu.matmul %38, %41, %cst_16 {dimension_numbers = #tpu.dot_dimension_numbers<[1], [0], [0], [1], [0, 0, 1, 1], [], []>} : vector<64x8xf32>, vector<8x64xf32>, vector<64x64xf32> -> vector<64x64xf32>
    %c0_17 = arith.constant 0 : index
    %c0_18 = arith.constant 0 : index
    %c0_19 = arith.constant 0 : index
    %43 = vector.load %arg7[%c0_17, %c0_18, %c0_19] : memref<4x64x64xf32, #tpu.memory_space<vmem>>, vector<1x64x64xf32>
    %44 = vector.shape_cast %43 : vector<1x64x64xf32> to vector<64x64xf32>
    %45 = arith.addf %42, %44 : vector<64x64xf32>
    %cst_20 = arith.constant dense<0xFF800000> : vector<64xf32>
    %46 = vector.multi_reduction <maximumf>, %45, %cst_20 [1] : vector<64x64xf32> to vector<64xf32>
    %47 = vector.shape_cast %46 : vector<64xf32> to vector<64x1xf32>
    %48 = vector.broadcast %47 : vector<64x1xf32> to vector<64x64xf32>
    %49 = arith.subf %45, %48 : vector<64x64xf32>
    %50 = math.exp %49 : vector<64x64xf32>
    %cst_21 = arith.constant dense<0.000000e+00> : vector<64xf32>
    %51 = vector.multi_reduction <add>, %50, %cst_21 [1] : vector<64x64xf32> to vector<64xf32>
    %52 = vector.shape_cast %51 : vector<64xf32> to vector<64x1xf32>
    %53 = tpu.reciprocal %52 {approx = true} : vector<64x1xf32> -> vector<64x1xf32>
    %54 = vector.broadcast %53 : vector<64x1xf32> to vector<64x64xf32>
    %55 = arith.mulf %50, %54 : vector<64x64xf32>
    %cst_22 = arith.constant dense<0.000000e+00> : vector<64x32xf32>
    %56 = tpu.matmul %55, %40, %cst_22 {dimension_numbers = #tpu.dot_dimension_numbers<[1], [0], [0], [1], [0, 0, 1, 1], [], []>} : vector<64x64xf32>, vector<64x32xf32>, vector<64x32xf32> -> vector<64x32xf32>
    %57 = arith.addf %37, %56 : vector<64x32xf32>
    %58 = vector.extract_strided_slice %36 {offsets = [0, 8], sizes = [64, 8], strides = [1, 1]} : vector<64x192xf32> to vector<64x8xf32>
    %59 = vector.extract_strided_slice %36 {offsets = [0, 40], sizes = [64, 8], strides = [1, 1]} : vector<64x192xf32> to vector<64x8xf32>
    %60 = vector.extract_strided_slice %36 {offsets = [0, 96], sizes = [64, 32], strides = [1, 1]} : vector<64x192xf32> to vector<64x32xf32>
    %61 = tpu.transpose %59, [1, 0] : vector<64x8xf32> -> vector<8x64xf32>
    %cst_23 = arith.constant dense<0.000000e+00> : vector<64x64xf32>
    %62 = tpu.matmul %58, %61, %cst_23 {dimension_numbers = #tpu.dot_dimension_numbers<[1], [0], [0], [1], [0, 0, 1, 1], [], []>} : vector<64x8xf32>, vector<8x64xf32>, vector<64x64xf32> -> vector<64x64xf32>
    %c1 = arith.constant 1 : index
    %c0_24 = arith.constant 0 : index
    %c0_25 = arith.constant 0 : index
    %63 = vector.load %arg7[%c1, %c0_24, %c0_25] : memref<4x64x64xf32, #tpu.memory_space<vmem>>, vector<1x64x64xf32>
    %64 = vector.shape_cast %63 : vector<1x64x64xf32> to vector<64x64xf32>
    %65 = arith.addf %62, %64 : vector<64x64xf32>
    %cst_26 = arith.constant dense<0xFF800000> : vector<64xf32>
    %66 = vector.multi_reduction <maximumf>, %65, %cst_26 [1] : vector<64x64xf32> to vector<64xf32>
    %67 = vector.shape_cast %66 : vector<64xf32> to vector<64x1xf32>
    %68 = vector.broadcast %67 : vector<64x1xf32> to vector<64x64xf32>
    %69 = arith.subf %65, %68 : vector<64x64xf32>
    %70 = math.exp %69 : vector<64x64xf32>
    %cst_27 = arith.constant dense<0.000000e+00> : vector<64xf32>
    %71 = vector.multi_reduction <add>, %70, %cst_27 [1] : vector<64x64xf32> to vector<64xf32>
    %72 = vector.shape_cast %71 : vector<64xf32> to vector<64x1xf32>
    %73 = tpu.reciprocal %72 {approx = true} : vector<64x1xf32> -> vector<64x1xf32>
    %74 = vector.broadcast %73 : vector<64x1xf32> to vector<64x64xf32>
    %75 = arith.mulf %70, %74 : vector<64x64xf32>
    %cst_28 = arith.constant dense<0.000000e+00> : vector<64x32xf32>
    %76 = tpu.matmul %75, %60, %cst_28 {dimension_numbers = #tpu.dot_dimension_numbers<[1], [0], [0], [1], [0, 0, 1, 1], [], []>} : vector<64x64xf32>, vector<64x32xf32>, vector<64x32xf32> -> vector<64x32xf32>
    %77 = arith.addf %57, %76 : vector<64x32xf32>
    %78 = vector.extract_strided_slice %36 {offsets = [0, 16], sizes = [64, 8], strides = [1, 1]} : vector<64x192xf32> to vector<64x8xf32>
    %79 = vector.extract_strided_slice %36 {offsets = [0, 48], sizes = [64, 8], strides = [1, 1]} : vector<64x192xf32> to vector<64x8xf32>
    %80 = vector.extract_strided_slice %36 {offsets = [0, 128], sizes = [64, 32], strides = [1, 1]} : vector<64x192xf32> to vector<64x32xf32>
    %81 = tpu.transpose %79, [1, 0] : vector<64x8xf32> -> vector<8x64xf32>
    %cst_29 = arith.constant dense<0.000000e+00> : vector<64x64xf32>
    %82 = tpu.matmul %78, %81, %cst_29 {dimension_numbers = #tpu.dot_dimension_numbers<[1], [0], [0], [1], [0, 0, 1, 1], [], []>} : vector<64x8xf32>, vector<8x64xf32>, vector<64x64xf32> -> vector<64x64xf32>
    %c2 = arith.constant 2 : index
    %c0_30 = arith.constant 0 : index
    %c0_31 = arith.constant 0 : index
    %83 = vector.load %arg7[%c2, %c0_30, %c0_31] : memref<4x64x64xf32, #tpu.memory_space<vmem>>, vector<1x64x64xf32>
    %84 = vector.shape_cast %83 : vector<1x64x64xf32> to vector<64x64xf32>
    %85 = arith.addf %82, %84 : vector<64x64xf32>
    %cst_32 = arith.constant dense<0xFF800000> : vector<64xf32>
    %86 = vector.multi_reduction <maximumf>, %85, %cst_32 [1] : vector<64x64xf32> to vector<64xf32>
    %87 = vector.shape_cast %86 : vector<64xf32> to vector<64x1xf32>
    %88 = vector.broadcast %87 : vector<64x1xf32> to vector<64x64xf32>
    %89 = arith.subf %85, %88 : vector<64x64xf32>
    %90 = math.exp %89 : vector<64x64xf32>
    %cst_33 = arith.constant dense<0.000000e+00> : vector<64xf32>
    %91 = vector.multi_reduction <add>, %90, %cst_33 [1] : vector<64x64xf32> to vector<64xf32>
    %92 = vector.shape_cast %91 : vector<64xf32> to vector<64x1xf32>
    %93 = tpu.reciprocal %92 {approx = true} : vector<64x1xf32> -> vector<64x1xf32>
    %94 = vector.broadcast %93 : vector<64x1xf32> to vector<64x64xf32>
    %95 = arith.mulf %90, %94 : vector<64x64xf32>
    %cst_34 = arith.constant dense<0.000000e+00> : vector<64x32xf32>
    %96 = tpu.matmul %95, %80, %cst_34 {dimension_numbers = #tpu.dot_dimension_numbers<[1], [0], [0], [1], [0, 0, 1, 1], [], []>} : vector<64x64xf32>, vector<64x32xf32>, vector<64x32xf32> -> vector<64x32xf32>
    %97 = arith.addf %77, %96 : vector<64x32xf32>
    %98 = vector.extract_strided_slice %36 {offsets = [0, 24], sizes = [64, 8], strides = [1, 1]} : vector<64x192xf32> to vector<64x8xf32>
    %99 = vector.extract_strided_slice %36 {offsets = [0, 56], sizes = [64, 8], strides = [1, 1]} : vector<64x192xf32> to vector<64x8xf32>
    %100 = vector.extract_strided_slice %36 {offsets = [0, 160], sizes = [64, 32], strides = [1, 1]} : vector<64x192xf32> to vector<64x32xf32>
    %101 = tpu.transpose %99, [1, 0] : vector<64x8xf32> -> vector<8x64xf32>
    %cst_35 = arith.constant dense<0.000000e+00> : vector<64x64xf32>
    %102 = tpu.matmul %98, %101, %cst_35 {dimension_numbers = #tpu.dot_dimension_numbers<[1], [0], [0], [1], [0, 0, 1, 1], [], []>} : vector<64x8xf32>, vector<8x64xf32>, vector<64x64xf32> -> vector<64x64xf32>
    %c3 = arith.constant 3 : index
    %c0_36 = arith.constant 0 : index
    %c0_37 = arith.constant 0 : index
    %103 = vector.load %arg7[%c3, %c0_36, %c0_37] : memref<4x64x64xf32, #tpu.memory_space<vmem>>, vector<1x64x64xf32>
    %104 = vector.shape_cast %103 : vector<1x64x64xf32> to vector<64x64xf32>
    %105 = arith.addf %102, %104 : vector<64x64xf32>
    %cst_38 = arith.constant dense<0xFF800000> : vector<64xf32>
    %106 = vector.multi_reduction <maximumf>, %105, %cst_38 [1] : vector<64x64xf32> to vector<64xf32>
    %107 = vector.shape_cast %106 : vector<64xf32> to vector<64x1xf32>
    %108 = vector.broadcast %107 : vector<64x1xf32> to vector<64x64xf32>
    %109 = arith.subf %105, %108 : vector<64x64xf32>
    %110 = math.exp %109 : vector<64x64xf32>
    %cst_39 = arith.constant dense<0.000000e+00> : vector<64xf32>
    %111 = vector.multi_reduction <add>, %110, %cst_39 [1] : vector<64x64xf32> to vector<64xf32>
    %112 = vector.shape_cast %111 : vector<64xf32> to vector<64x1xf32>
    %113 = tpu.reciprocal %112 {approx = true} : vector<64x1xf32> -> vector<64x1xf32>
    %114 = vector.broadcast %113 : vector<64x1xf32> to vector<64x64xf32>
    %115 = arith.mulf %110, %114 : vector<64x64xf32>
    %cst_40 = arith.constant dense<0.000000e+00> : vector<64x32xf32>
    %116 = tpu.matmul %115, %100, %cst_40 {dimension_numbers = #tpu.dot_dimension_numbers<[1], [0], [0], [1], [0, 0, 1, 1], [], []>} : vector<64x64xf32>, vector<64x32xf32>, vector<64x32xf32> -> vector<64x32xf32>
    %117 = arith.addf %97, %116 : vector<64x32xf32>
    %118 = arith.addf %1, %117 : vector<64x32xf32>
    %c0_41 = arith.constant 0 : index
    %c0_42 = arith.constant 0 : index
    %119 = vector.load %arg6[%c0_41, %c0_42] : memref<1x32xf32, #tpu.memory_space<vmem>>, vector<1x32xf32>
    %120 = vector.shape_cast %119 : vector<1x32xf32> to vector<32xf32>
    %121 = vector.shape_cast %120 : vector<32xf32> to vector<1x32xf32>
    %122 = vector.broadcast %121 : vector<1x32xf32> to vector<64x32xf32>
    %123 = arith.addf %118, %122 : vector<64x32xf32>
    %cst_43 = arith.constant dense<0.000000e+00> : vector<64xf32>
    %124 = vector.multi_reduction <add>, %123, %cst_43 [1] : vector<64x32xf32> to vector<64xf32>
    %125 = vector.shape_cast %124 : vector<64xf32> to vector<64x1xf32>
    %cst_44 = arith.constant 3.200000e+01 : f32
    %126 = vector.broadcast %cst_44 : f32 to vector<64x1xf32>
    %127 = arith.divf %125, %126 : vector<64x1xf32>
    %128 = arith.mulf %123, %123 : vector<64x32xf32>
    %cst_45 = arith.constant dense<0.000000e+00> : vector<64xf32>
    %129 = vector.multi_reduction <add>, %128, %cst_45 [1] : vector<64x32xf32> to vector<64xf32>
    %130 = vector.shape_cast %129 : vector<64xf32> to vector<64x1xf32>
    %cst_46 = arith.constant 3.200000e+01 : f32
    %131 = vector.broadcast %cst_46 : f32 to vector<64x1xf32>
    %132 = arith.divf %130, %131 : vector<64x1xf32>
    %133 = vector.broadcast %127 : vector<64x1xf32> to vector<64x32xf32>
    %134 = arith.subf %123, %133 : vector<64x32xf32>
    %135 = arith.mulf %127, %127 : vector<64x1xf32>
    %136 = arith.subf %132, %135 : vector<64x1xf32>
    %cst_47 = arith.constant 9.99999974E-6 : f32
    %137 = vector.broadcast %cst_47 : f32 to vector<64x1xf32>
    %138 = arith.addf %136, %137 : vector<64x1xf32>
    %139 = math.rsqrt %138 : vector<64x1xf32>
    %140 = vector.broadcast %139 : vector<64x1xf32> to vector<64x32xf32>
    %141 = arith.mulf %134, %140 : vector<64x32xf32>
    %c0_48 = arith.constant 0 : index
    %c0_49 = arith.constant 0 : index
    %142 = vector.load %arg8[%c0_48, %c0_49] : memref<1x32xf32, #tpu.memory_space<vmem>>, vector<1x32xf32>
    %143 = vector.shape_cast %142 : vector<1x32xf32> to vector<32xf32>
    %144 = vector.shape_cast %143 : vector<32xf32> to vector<1x32xf32>
    %145 = vector.broadcast %144 : vector<1x32xf32> to vector<64x32xf32>
    %146 = arith.mulf %141, %145 : vector<64x32xf32>
    %c0_50 = arith.constant 0 : index
    %c0_51 = arith.constant 0 : index
    %147 = vector.load %arg9[%c0_50, %c0_51] : memref<1x32xf32, #tpu.memory_space<vmem>>, vector<1x32xf32>
    %148 = vector.shape_cast %147 : vector<1x32xf32> to vector<32xf32>
    %149 = vector.shape_cast %148 : vector<32xf32> to vector<1x32xf32>
    %150 = vector.broadcast %149 : vector<1x32xf32> to vector<64x32xf32>
    %151 = arith.addf %146, %150 : vector<64x32xf32>
    %c0_52 = arith.constant 0 : index
    %c0_53 = arith.constant 0 : index
    %152 = vector.load %arg10[%c0_52, %c0_53] : memref<32x128xf32, #tpu.memory_space<vmem>>, vector<32x128xf32>
    %cst_54 = arith.constant dense<0.000000e+00> : vector<64x128xf32>
    %153 = tpu.matmul %151, %152, %cst_54 {dimension_numbers = #tpu.dot_dimension_numbers<[1], [0], [0], [1], [0, 0, 1, 1], [], []>} : vector<64x32xf32>, vector<32x128xf32>, vector<64x128xf32> -> vector<64x128xf32>
    %c0_55 = arith.constant 0 : index
    %c0_56 = arith.constant 0 : index
    %154 = vector.load %arg11[%c0_55, %c0_56] : memref<1x128xf32, #tpu.memory_space<vmem>>, vector<1x128xf32>
    %155 = vector.shape_cast %154 : vector<1x128xf32> to vector<128xf32>
    %156 = vector.shape_cast %155 : vector<128xf32> to vector<1x128xf32>
    %157 = vector.broadcast %156 : vector<1x128xf32> to vector<64x128xf32>
    %158 = arith.addf %153, %157 : vector<64x128xf32>
    %cst_57 = arith.constant 5.000000e-01 : f32
    %159 = vector.broadcast %cst_57 : f32 to vector<64x128xf32>
    %160 = arith.mulf %159, %158 : vector<64x128xf32>
    %cst_58 = arith.constant 0.707106769 : f32
    %161 = vector.broadcast %cst_58 : f32 to vector<64x128xf32>
    %162 = arith.mulf %158, %161 : vector<64x128xf32>
    %163 = math.absf %162 : vector<64x128xf32>
    %cst_59 = arith.constant 0.327591091 : f32
    %164 = vector.broadcast %cst_59 : f32 to vector<64x128xf32>
    %165 = arith.mulf %164, %163 : vector<64x128xf32>
    %cst_60 = arith.constant 1.000000e+00 : f32
    %166 = vector.broadcast %cst_60 : f32 to vector<64x128xf32>
    %167 = arith.addf %166, %165 : vector<64x128xf32>
    %cst_61 = arith.constant 1.000000e+00 : f32
    %168 = vector.broadcast %cst_61 : f32 to vector<64x128xf32>
    %169 = arith.divf %168, %167 : vector<64x128xf32>
    %cst_62 = arith.constant 1.06140542 : f32
    %170 = vector.broadcast %cst_62 : f32 to vector<64x128xf32>
    %171 = arith.mulf %170, %169 : vector<64x128xf32>
    %cst_63 = arith.constant -1.45315206 : f32
    %172 = vector.broadcast %cst_63 : f32 to vector<64x128xf32>
    %173 = arith.addf %171, %172 : vector<64x128xf32>
    %174 = arith.mulf %173, %169 : vector<64x128xf32>
    %cst_64 = arith.constant 1.42141378 : f32
    %175 = vector.broadcast %cst_64 : f32 to vector<64x128xf32>
    %176 = arith.addf %174, %175 : vector<64x128xf32>
    %177 = arith.mulf %176, %169 : vector<64x128xf32>
    %cst_65 = arith.constant -0.284496725 : f32
    %178 = vector.broadcast %cst_65 : f32 to vector<64x128xf32>
    %179 = arith.addf %177, %178 : vector<64x128xf32>
    %180 = arith.mulf %179, %169 : vector<64x128xf32>
    %cst_66 = arith.constant 0.254829586 : f32
    %181 = vector.broadcast %cst_66 : f32 to vector<64x128xf32>
    %182 = arith.addf %180, %181 : vector<64x128xf32>
    %183 = arith.mulf %182, %169 : vector<64x128xf32>
    %cst_67 = arith.constant 0.000000e+00 : f32
    %184 = vector.broadcast %cst_67 : f32 to vector<64x128xf32>
    %185 = arith.subf %184, %163 : vector<64x128xf32>
    %186 = arith.mulf %185, %163 : vector<64x128xf32>
    %187 = math.exp %186 : vector<64x128xf32>
    %188 = arith.mulf %183, %187 : vector<64x128xf32>
    %cst_68 = arith.constant 1.000000e+00 : f32
    %189 = vector.broadcast %cst_68 : f32 to vector<64x128xf32>
    %190 = arith.subf %189, %188 : vector<64x128xf32>
    %cst_69 = arith.constant 0.000000e+00 : f32
    %191 = vector.broadcast %cst_69 : f32 to vector<64x128xf32>
    %192 = arith.cmpf oge, %162, %191 : vector<64x128xf32>
    %cst_70 = arith.constant 0.000000e+00 : f32
    %193 = vector.broadcast %cst_70 : f32 to vector<64x128xf32>
    %194 = arith.subf %193, %190 : vector<64x128xf32>
    %195 = arith.select %192, %190, %194 : vector<64x128xi1>, vector<64x128xf32>
    %cst_71 = arith.constant 1.000000e+00 : f32
    %196 = vector.broadcast %cst_71 : f32 to vector<64x128xf32>
    %197 = arith.addf %196, %195 : vector<64x128xf32>
    %198 = arith.mulf %160, %197 : vector<64x128xf32>
    %c0_72 = arith.constant 0 : index
    %c0_73 = arith.constant 0 : index
    %199 = vector.load %arg12[%c0_72, %c0_73] : memref<128x32xf32, #tpu.memory_space<vmem>>, vector<128x32xf32>
    %cst_74 = arith.constant dense<0.000000e+00> : vector<64x32xf32>
    %200 = tpu.matmul %198, %199, %cst_74 {dimension_numbers = #tpu.dot_dimension_numbers<[1], [0], [0], [1], [0, 0, 1, 1], [], []>} : vector<64x128xf32>, vector<128x32xf32>, vector<64x32xf32> -> vector<64x32xf32>
    %c0_75 = arith.constant 0 : index
    %c0_76 = arith.constant 0 : index
    %201 = vector.load %arg13[%c0_75, %c0_76] : memref<1x32xf32, #tpu.memory_space<vmem>>, vector<1x32xf32>
    %202 = vector.shape_cast %201 : vector<1x32xf32> to vector<32xf32>
    %203 = vector.shape_cast %202 : vector<32xf32> to vector<1x32xf32>
    %204 = vector.broadcast %203 : vector<1x32xf32> to vector<64x32xf32>
    %205 = arith.addf %200, %204 : vector<64x32xf32>
    %206 = arith.addf %123, %205 : vector<64x32xf32>
    %c0_77 = arith.constant 0 : index
    %c0_78 = arith.constant 0 : index
    %c0_79 = arith.constant 0 : index
    %207 = vector.load %arg14[%c0_77, %c0_78, %c0_79] : memref<1x64x32xf32, #tpu.memory_space<vmem>>, vector<1x64x32xf32>
    %208 = vector.shape_cast %207 : vector<1x64x32xf32> to vector<64x32xf32>
    %209 = vector.shape_cast %206 : vector<64x32xf32> to vector<1x64x32xf32>
    tpu.vector_store %arg14[%c0_77, %c0_78, %c0_79], %209 {strides = array<i32>} : memref<1x64x32xf32, #tpu.memory_space<vmem>>, vector<1x64x32xf32>,
    return
  }
  func.func @transform_0(%arg0: i32) -> (i32, i32, i32) {
    %c0_i32 = arith.constant 0 : i32
    %c0_i32_0 = arith.constant 0 : i32
    %c0_i32_1 = arith.constant 0 : i32
    return %arg0, %c0_i32, %c0_i32_0 : i32, i32, i32
  }
  func.func @transform_1(%arg0: i32) -> (i32, i32) {
    %c0_i32 = arith.constant 0 : i32
    %c0_i32_0 = arith.constant 0 : i32
    %c0_i32_1 = arith.constant 0 : i32
    return %c0_i32, %c0_i32_0 : i32, i32
  }
  func.func @transform_2(%arg0: i32) -> (i32, i32) {
    %c0_i32 = arith.constant 0 : i32
    %c0_i32_0 = arith.constant 0 : i32
    %c0_i32_1 = arith.constant 0 : i32
    return %c0_i32, %c0_i32_0 : i32, i32
  }
  func.func @transform_3(%arg0: i32) -> (i32, i32) {
    %c0_i32 = arith.constant 0 : i32
    %c0_i32_0 = arith.constant 0 : i32
    %c0_i32_1 = arith.constant 0 : i32
    return %c0_i32, %c0_i32_0 : i32, i32
  }
  func.func @transform_4(%arg0: i32) -> (i32, i32) {
    %c0_i32 = arith.constant 0 : i32
    %c0_i32_0 = arith.constant 0 : i32
    %c0_i32_1 = arith.constant 0 : i32
    return %c0_i32, %c0_i32_0 : i32, i32
  }
  func.func @transform_5(%arg0: i32) -> (i32, i32) {
    %c0_i32 = arith.constant 0 : i32
    %c0_i32_0 = arith.constant 0 : i32
    %c0_i32_1 = arith.constant 0 : i32
    return %c0_i32, %c0_i32_0 : i32, i32
  }
  func.func @transform_6(%arg0: i32) -> (i32, i32, i32) {
    %c0_i32 = arith.constant 0 : i32
    %c0_i32_0 = arith.constant 0 : i32
    %c0_i32_1 = arith.constant 0 : i32
    %c0_i32_2 = arith.constant 0 : i32
    return %c0_i32, %c0_i32_0, %c0_i32_1 : i32, i32, i32
  }
  func.func @transform_7(%arg0: i32) -> (i32, i32) {
    %c0_i32 = arith.constant 0 : i32
    %c0_i32_0 = arith.constant 0 : i32
    %c0_i32_1 = arith.constant 0 : i32
    return %c0_i32, %c0_i32_0 : i32, i32
  }
  func.func @transform_8(%arg0: i32) -> (i32, i32) {
    %c0_i32 = arith.constant 0 : i32
    %c0_i32_0 = arith.constant 0 : i32
    %c0_i32_1 = arith.constant 0 : i32
    return %c0_i32, %c0_i32_0 : i32, i32
  }
  func.func @transform_9(%arg0: i32) -> (i32, i32) {
    %c0_i32 = arith.constant 0 : i32
    %c0_i32_0 = arith.constant 0 : i32
    %c0_i32_1 = arith.constant 0 : i32
    return %c0_i32, %c0_i32_0 : i32, i32
  }
  func.func @transform_10(%arg0: i32) -> (i32, i32) {
    %c0_i32 = arith.constant 0 : i32
    %c0_i32_0 = arith.constant 0 : i32
    %c0_i32_1 = arith.constant 0 : i32
    return %c0_i32, %c0_i32_0 : i32, i32
  }
  func.func @transform_11(%arg0: i32) -> (i32, i32) {
    %c0_i32 = arith.constant 0 : i32
    %c0_i32_0 = arith.constant 0 : i32
    %c0_i32_1 = arith.constant 0 : i32
    return %c0_i32, %c0_i32_0 : i32, i32
  }
  func.func @transform_12(%arg0: i32) -> (i32, i32) {
    %c0_i32 = arith.constant 0 : i32
    %c0_i32_0 = arith.constant 0 : i32
    %c0_i32_1 = arith.constant 0 : i32
    return %c0_i32, %c0_i32_0 : i32, i32
  }
  func.func @transform_13(%arg0: i32) -> (i32, i32, i32) {
    %c0_i32 = arith.constant 0 : i32
    %c0_i32_0 = arith.constant 0 : i32
    %c0_i32_1 = arith.constant 0 : i32
    return %arg0, %c0_i32, %c0_i32_0 : i32, i32, i32
  }
}

</mosaic_0001>

<bundles_post_ra>
// kernel: _lambda_.1
= control target key start
LH: loop header
LB: loop body
LE: loop exit
PB: predicated region body
PF: predicated region fallthrough
CT: control target
= control target key end

     0   :  { %s4441_s25 = smov 0   ;;  %s5661_s0 = inlined_call_operand.vmem [shape: f32[2,64,32], index: 0, kind: input, shape index: {}]   ;;  %s5662_s1 = inlined_call_operand.vmem [shape: f32[1,32], index: 1, kind: input, shape index: {}, may-alias: {1,7}]   ;;  %s5663_s2 = inlined_call_operand.vmem [shape: f32[1,32], index: 2, kind: input, shape index: {}, may-alias: {2,8}]   ;;  %s5664_s3 = inlined_call_operand.vmem [shape: f32[32,192], index: 3, kind: input, shape index: {}]   ;;  %s5665_s4 = inlined_call_operand.vmem [shape: f32[1,192], index: 4, kind: input, shape index: {}]   ;;  %s5666_s5 = inlined_call_operand.vmem [shape: f32[1,32], index: 5, kind: input, shape index: {}]   ;;  %s5667_s6 = inlined_call_operand.vmem [shape: f32[4,64,64], index: 6, kind: input, shape index: {}]   ;;  %s5668_s7 = inlined_call_operand.vmem [shape: f32[1,32], index: 7, kind: input, shape index: {}, may-alias: {1,7}]   ;;  %s5669_s8 = inlined_call_operand.vmem [shape: f32[1,32], index: 8, kind: input, shape index: {}, may-alias: {2,8}]   ;;  %s5670_s9 = inlined_call_operand.vmem [shape: f32[32,128], index: 9, kind: input, shape index: {}]   ;;  %s5671_s10 = inlined_call_operand.vmem [shape: f32[1,128], index: 10, kind: input, shape index: {}]   ;;  %s5672_s11 = inlined_call_operand.vmem [shape: f32[128,32], index: 11, kind: input, shape index: {}]   ;;  %s5673_s12 = inlined_call_operand.vmem [shape: f32[1,32], index: 12, kind: input, shape index: {}]   ;;  %s5674_s13 = inlined_call_operand.vmem [shape: f32[2,64,32], index: 13, kind: output, shape index: {}]  }
   0x1 LB: > { %s3155_s26 = sadd.s32 4294967295, %s4359_s25   ;;  %p3159_p0 = scmp.ge.s32.totalorder %s4359_s25, 1  ;;  %s4359_s25 = sphi %s4441_s25, %s23_s25  }
   0x2   : > { %p387_p1 = scmp.lt.s32.totalorder %s4359_s25, 3 }
   0x4   : > { %p388_p2 = pnand %p3159_p0, %p387_p1 }
   0x5   : > { %p431_p3 = scmp.lt.s32.totalorder (!%p388_p2), %s3155_s26, 1  ;;  %vm449_vm0 = vcmask (!%p388_p2), 261120   ;;  %v602_v32 = vld [vmem:[%s5664_s3 + $0x8] sm:$0xff] (!%p388_p2)  ;;  %v604_v33 = vld [vmem:[%s5664_s3 + $0x18] sm:$0xff] (!%p388_p2)  ;;  %v601_v35 = vld [vmem:[%s5664_s3] sm:$0xff] (!%p388_p2)  ;;  %v4361_v44 = vmov (!%p388_p2), 0.0  }
   0x6   : > { %391 = sbr.rel (%p388_p2) target bundleno = 2082 (0x822), region = 72  ;;  %v3763_v34 = vpack.c.bf16 (!%p388_p2), %v604_v33, %v602_v32  ;;  %v603_v36 = vld [vmem:[%s5664_s3 + $0x10] sm:$0xff] (!%p388_p2)  ;;  %v606_v38 = vld [vmem:[%s5664_s3 + $0x28] sm:$0xff] (!%p388_p2)  ;;  %v608_v39 = vld [vmem:[%s5664_s3 + $0x38] sm:$0xff] (!%p388_p2)  ;;  %709 = vmatprep.mubr.f32.mxu1 (!%p388_p2), %v4361_v44  ;;  %vm790_vm1 = vcmask (!%p388_p2), 64512   ;;  %s4362_s23 = smov (!%p388_p2), 88  }
   0x7   : > { %v3765_v37 = vpack.c.bf16 (!%p388_p2), %v603_v36, %v601_v35  ;;  %v3767_v40 = vpack.c.bf16 (!%p388_p2), %v608_v39, %v606_v38  ;;  %v605_v41 = vld [vmem:[%s5664_s3 + $0x20] sm:$0xff] (!%p388_p2)  ;;  %v607_v42 = vld [vmem:[%s5664_s3 + $0x30] sm:$0xff] (!%p388_p2)  ;;  %s4363_s24 = smov (!%p388_p2), 96   ;;  %s4364_s28 = smov (!%p388_p2), 120   ;;  %vm4714_vm2 = vmpackc.low (!%p388_p2), %vm790_vm1, %vm790_vm1  ;;  %vm928_vm3 = vcmask (!%p388_p2), 523264  }
   0x8   : > { %3764 = vmatprep.subr.bf16.mxu1 (!%p388_p2), %v3763_v34  ;;  %v3769_v43 = vpack.c.bf16 (!%p388_p2), %v607_v42, %v605_v41  ;;  %v4553_v34 = vld [vmem:[%s5662_s1] ss:$0 sm:$0xff] (!%p388_p2)  ;;  %s4365_s29 = smov (!%p388_p2), 80   ;;  %s4366_s14 = smov (!%p388_p2), 72  }
   0x9   : > { %3766 = vmatpush1.bf16.msra.mxu1 (!%p388_p2), %v3765_v37  ;;  %s4367_s15 = smov (!%p388_p2), 112   ;;  %s4368_s16 = smov (!%p388_p2), 104  }
   0xa   : > { %3768 = vmatprep.subr.bf16.mxu1 (!%p388_p2), %v3767_v40  ;;  %v3165_v40 = vld [vmem:[%s5663_s2] ss:$0 sm:$0xff] (!%p388_p2)  ;;  %s4369_s17 = smov (!%p388_p2), 32   ;;  %s4370_s18 = smov (!%p388_p2), 64  }
   0xd   : > { %s5680_s26 = smov (!%p431_p3, %s3155_s26), 1  ;;  %3770 = vmatpush1.bf16.msra.mxu1 %v3769_v43 }
   0xe   : > { %s3309_s27 = sshll.u32 %s5680_s26, 6 }
   0xf   : > { %s4457_s30 = scalar_lea.vmem %s5661_s0, %s3309_s27  ;;  %s440_s19 = scalar_lea.vmem %s5674_s13, %s3309_s27 }
  0x10   : > { %v4460_v0 = vld [vmem:[%s4457_s30 + $0x8] sm:$0xff]  ;;  %v4463_v1 = vld [vmem:[%s4457_s30] sm:$0xff]  ;;  %v4466_v2 = vld [vmem:[%s4457_s30 + $0x10] sm:$0xff] }
  0x11   : > { %v453_v3 = vsel %vm449_vm0, %v4460_v0, 0.0  ;;  %v450_v4 = vsel %vm449_vm0, %v4463_v1, 0.0  ;;  %v484_v5 = vmul.f32 %v4460_v0, %v4460_v0  ;;  %v483_v6 = vmul.f32 %v4463_v1, %v4463_v1  ;;  %v4481_v10 = vld [vmem:[%s4457_s30 + $0x18] sm:$0xff]  ;;  %v4489_v14 = vld [vmem:[%s4457_s30 + $0x20] sm:$0xff]  ;;  %v4497_v18 = vld [vmem:[%s4457_s30 + $0x28] sm:$0xff] }
  0x12   : > { %454 = vadd.xlane.f32.xlu1 %v453_v3  ;;  %451 = vadd.xlane.f32.xlu0 %v450_v4  ;;  %v485_v9 = vmul.f32 %v4466_v2, %v4466_v2  ;;  %v456_v11 = vsel %vm449_vm0, %v4466_v2, 0.0  ;;  %v486_v13 = vmul.f32 %v4481_v10, %v4481_v10  ;;  %v459_v15 = vsel %vm449_vm0, %v4481_v10, 0.0  ;;  %v4505_v22 = vld [vmem:[%s4457_s30 + $0x30] sm:$0xff]  ;;  %v4513_v26 = vld [vmem:[%s4457_s30 + $0x38] sm:$0xff] }
  0x13   : > { %v494_v7 = vsel %vm449_vm0, %v484_v5, 0.0  ;;  %v491_v8 = vsel %vm449_vm0, %v483_v6, 0.0  ;;  %v487_v17 = vmul.f32 %v4489_v14, %v4489_v14  ;;  %v462_v19 = vsel %vm449_vm0, %v4489_v14, 0.0 }
  0x14   : > { %v497_v12 = vsel %vm449_vm0, %v485_v9, 0.0  ;;  %v500_v16 = vsel %vm449_vm0, %v486_v13, 0.0  ;;  %v488_v21 = vmul.f32 %v4497_v18, %v4497_v18  ;;  %v465_v23 = vsel %vm449_vm0, %v4497_v18, 0.0 }
  0x15   : > { %v503_v20 = vsel %vm449_vm0, %v487_v17, 0.0  ;;  %v489_v25 = vmul.f32 %v4505_v22, %v4505_v22  ;;  %v468_v27 = vsel %vm449_vm0, %v4505_v22, 0.0  ;;  %v490_v29 = vmul.f32 %v4513_v26, %v4513_v26 }
  0x16   : > { %495 = vadd.xlane.f32.xlu1 %v494_v7  ;;  %492 = vadd.xlane.f32.xlu0 %v491_v8  ;;  %v506_v24 = vsel %vm449_vm0, %v488_v21, 0.0  ;;  %v471_v30 = vsel %vm449_vm0, %v4513_v26, 0.0 }
  0x17   : > { %v509_v28 = vsel %vm449_vm0, %v489_v25, 0.0  ;;  %v512_v31 = vsel %vm449_vm0, %v490_v29, 0.0 }
  0x1a   : > { %457 = vadd.xlane.f32.xlu0 %v456_v11  ;;  %498 = vadd.xlane.f32.xlu1 %v497_v12 }
  0x1e   : > { %460 = vadd.xlane.f32.xlu0 %v459_v15  ;;  %501 = vadd.xlane.f32.xlu1 %v500_v16 }
  0x22   : > { %463 = vadd.xlane.f32.xlu0 %v462_v19  ;;  %504 = vadd.xlane.f32.xlu1 %v503_v20 }
  0x26   : > { %466 = vadd.xlane.f32.xlu0 %v465_v23  ;;  %507 = vadd.xlane.f32.xlu1 %v506_v24 }
  0x2a   : > { %469 = vadd.xlane.f32.xlu0 %v468_v27  ;;  %510 = vadd.xlane.f32.xlu1 %v509_v28 }
  0x2e   : > { %472 = vadd.xlane.f32.xlu0 %v471_v30  ;;  %513 = vadd.xlane.f32.xlu1 %v512_v31 }
  0x9f   : > { %v455_v45 = vpop.xlane.xlu1 %454  ;;  %v452_v46 = vpop.xlane.xlu0 %451 }
  0xa0   : > { %v476_v47 = vmul.f32 0.03125, %v455_v45  ;;  %v475_v48 = vmul.f32 0.03125, %v452_v46 }
  0xa2   : > { %v532_v49 = vmul.f32 %v476_v47, %v476_v47  ;;  %v531_v52 = vmul.f32 %v475_v48, %v475_v48  ;;  %v523_v20 = vsub.f32 %v4463_v1, %v475_v48  ;;  %v524_v30 = vsub.f32 %v4460_v0, %v476_v47 }
  0xa3   : > { %v496_v50 = vpop.xlane.xlu1 %495  ;;  %v493_v51 = vpop.xlane.xlu0 %492 }
  0xa4   : > { %v516_v53 = vmul.f32 0.03125, %v496_v50  ;;  %v515_v54 = vmul.f32 0.03125, %v493_v51 }
  0xa6   : > { %v540_v55 = vsub.f32 %v516_v53, %v532_v49  ;;  %v539_v56 = vsub.f32 %v515_v54, %v531_v52 }
  0xa7   : > { %v458_v57 = vpop.xlane.xlu0 %457  ;;  %v499_v58 = vpop.xlane.xlu1 %498 }
  0xa8   : > { %v548_v59 = vadd.f32 1e-05, %v540_v55  ;;  %v547_v60 = vadd.f32 1e-05, %v539_v56  ;;  %v477_v61 = vmul.f32 0.03125, %v458_v57  ;;  %v517_v62 = vmul.f32 0.03125, %v499_v58 }
  0xaa   : > { %4153 = vrsqrt.f32 %v548_v59  ;;  %v533_v63 = vmul.f32 %v477_v61, %v477_v61  ;;  %v525_v0 = vsub.f32 %v4466_v2, %v477_v61 }
  0xab   : > { %4155 = vrsqrt.f32 %v547_v60  ;;  %v461_v3 = vpop.xlane.xlu0 %460  ;;  %v502_v4 = vpop.xlane.xlu1 %501 }
  0xac   : > { %v541_v5 = vsub.f32 %v517_v62, %v533_v63  ;;  %v478_v6 = vmul.f32 0.03125, %v461_v3  ;;  %v518_v7 = vmul.f32 0.03125, %v502_v4 }
  0xae   : > { %v549_v8 = vadd.f32 1e-05, %v541_v5  ;;  %v534_v9 = vmul.f32 %v478_v6, %v478_v6  ;;  %v526_v54 = vsub.f32 %v4481_v10, %v478_v6 }
  0xaf   : > { %v464_v11 = vpop.xlane.xlu0 %463  ;;  %v505_v12 = vpop.xlane.xlu1 %504 }
  0xb0   : > { %4157 = vrsqrt.f32 %v549_v8  ;;  %v542_v13 = vsub.f32 %v518_v7, %v534_v9  ;;  %v479_v15 = vmul.f32 0.03125, %v464_v11  ;;  %v519_v16 = vmul.f32 0.03125, %v505_v12 }
  0xb2   : > { %v550_v17 = vadd.f32 1e-05, %v542_v13  ;;  %v535_v19 = vmul.f32 %v479_v15, %v479_v15  ;;  %v527_v61 = vsub.f32 %v4489_v14, %v479_v15 }
  0xb3   : > { %v467_v21 = vpop.xlane.xlu0 %466  ;;  %v508_v23 = vpop.xlane.xlu1 %507 }
  0xb4   : > { %v4154_v24 = vpop.eup %4153  ;;  %4159 = vrsqrt.f32 %v550_v17  ;;  %v543_v25 = vsub.f32 %v519_v16, %v535_v19  ;;  %v480_v27 = vmul.f32 0.03125, %v467_v21  ;;  %v520_v28 = vmul.f32 0.03125, %v508_v23 }
  0xb5   : > { %v4156_v29 = vpop.eup %4155  ;;  %v564_v36 = vmul.f32 %v4154_v24, %v524_v30  ;;  %v611_v23 = vlaneseq }
  0xb6   : > { %v551_v31 = vadd.f32 1e-05, %v543_v25  ;;  %v536_v32 = vmul.f32 %v480_v27, %v480_v27  ;;  %v563_v33 = vmul.f32 %v4156_v29, %v523_v20  ;;  %v528_v5 = vsub.f32 %v4497_v18, %v480_v27  ;;  %v609_v27 = vld [vmem:[%s5665_s4] sm:$0x3] }
  0xb7   : > { %v470_v35 = vpop.xlane.xlu0 %469  ;;  %v511_v1 = vpop.xlane.xlu1 %510  ;;  %v579_v49 = vmul.f32 %v4553_v34, %v564_v36  ;;  %v612_v24 = vshrl.u32 %v611_v23, 7 }
  0xb8   : > { %4161 = vrsqrt.f32 %v551_v31  ;;  %v544_v37 = vsub.f32 %v520_v28, %v536_v32  ;;  %v481_v38 = vmul.f32 0.03125, %v470_v35  ;;  %v521_v39 = vmul.f32 0.03125, %v511_v1 }
  0xb9   : > { %v578_v41 = vmul.f32 %v4553_v34, %v563_v33  ;;  %v594_v57 = vadd.f32 %v3165_v40, %v579_v49  ;;  %v613_v25 = vsub.s32 0, %v612_v24  ;;  %v617_v29 = vsub.s32 1, %v612_v24 }
  0xba   : > { %v4158_v42 = vpop.eup %4157  ;;  %v552_v43 = vadd.f32 1e-05, %v544_v37  ;;  %v537_v45 = vmul.f32 %v481_v38, %v481_v38  ;;  %v529_v9 = vsub.f32 %v4505_v22, %v481_v38 }
  0xbb   : > { %v593_v46 = vadd.f32 %v3165_v40, %v578_v41  ;;  %v473_v47 = vpop.xlane.xlu0 %472  ;;  %v514_v48 = vpop.xlane.xlu1 %513  ;;  %v565_v50 = vmul.f32 %v4158_v42, %v525_v0  ;;  %v614_v28 = vrot.slane %v609_v27, %v613_v25  ;;  %v618_v33 = vrot.slane %v609_v27, %v617_v29 }
  0xbc   : > { %4163 = vrsqrt.f32 %v552_v43  ;;  %v545_v51 = vsub.f32 %v521_v39, %v537_v45  ;;  %v482_v52 = vmul.f32 0.03125, %v473_v47  ;;  %v522_v53 = vmul.f32 0.03125, %v514_v48 }
  0xbd   : > { %3166 = vmatmul.mubr.msk.f32.vlgmr.msra.gmra.mrb[0].mxu1 %vm449_vm0, %v593_v46  ;;  %v580_v58 = vmul.f32 %v4553_v34, %v565_v50 }
  0xbe   : > { %v4160_v2 = vpop.eup %4159  ;;  %v553_v55 = vadd.f32 1e-05, %v545_v51  ;;  %v538_v56 = vmul.f32 %v482_v52, %v482_v52  ;;  %715 = vmatprep.mubr.f32.mxu1 %v4361_v44  ;;  %v530_v15 = vsub.f32 %v4513_v26, %v482_v52 }
  0xbf   : > { %v566_v59 = vmul.f32 %v4160_v2, %v526_v54  ;;  %v595_v10 = vadd.f32 %v3165_v40, %v580_v58 }
  0xc0   : > { %4165 = vrsqrt.f32 %v553_v55  ;;  %v546_v60 = vsub.f32 %v522_v53, %v538_v56 }
  0xc1   : > { %3167 = vmatmul.mubr.msk.f32.gmra.mrb[2].mxu1 %vm449_vm0, %v594_v57  ;;  %v581_v3 = vmul.f32 %v4553_v34, %v566_v59 }
  0xc2   : > { %v4162_v62 = vpop.eup %4161  ;;  %v554_v63 = vadd.f32 1e-05, %v546_v60  ;;  %721 = vmatprep.mubr.f32.mxu1 %v4361_v44 }
  0xc3   : > { %v567_v4 = vmul.f32 %v4162_v62, %v527_v61  ;;  %v596_v7 = vadd.f32 %v3165_v40, %v581_v3 }
  0xc4   : > { %4167 = vrsqrt.f32 %v554_v63 }
  0xc5   : > { %3168 = vmatmul.mubr.msk.f32.gmra.mrb[4].mxu1 %vm449_vm0, %v595_v10  ;;  %v582_v14 = vmul.f32 %v4553_v34, %v567_v4 }
  0xc6   : > { %v4164_v6 = vpop.eup %4163  ;;  %727 = vmatprep.mubr.f32.mxu1 %v4361_v44 }
  0xc7   : > { %v568_v8 = vmul.f32 %v4164_v6, %v528_v5  ;;  %v597_v12 = vadd.f32 %v3165_v40, %v582_v14 }
  0xc9   : > { %3169 = vmatmul.mubr.msk.f32.gmra.mrb[6].mxu1 %vm449_vm0, %v596_v7  ;;  %v583_v13 = vmul.f32 %v4553_v34, %v568_v8 }
  0xca   : > { %v4166_v11 = vpop.eup %4165  ;;  %733 = vmatprep.mubr.f32.mxu1 %v4361_v44 }
  0xcb   : > { %v569_v18 = vmul.f32 %v4166_v11, %v529_v9  ;;  %v598_v17 = vadd.f32 %v3165_v40, %v583_v13 }
  0xcd   : > { %3170 = vmatmul.mubr.msk.f32.gmra.mrb[8].mxu1 %vm449_vm0, %v597_v12  ;;  %v584_v19 = vmul.f32 %v4553_v34, %v569_v18 }
  0xce   : > { %v4168_v16 = vpop.eup %4167  ;;  %739 = vmatprep.mubr.f32.mxu1 %v4361_v44 }
  0xcf   : > { %v570_v22 = vmul.f32 %v4168_v16, %v530_v15  ;;  %v599_v20 = vadd.f32 %v3165_v40, %v584_v19 }
  0xd1   : > { %3171 = vmatmul.mubr.msk.f32.gmra.mrb[10].mxu1 %vm449_vm0, %v598_v17  ;;  %v585_v21 = vmul.f32 %v4553_v34, %v570_v22 }
  0xd2   : > { %745 = vmatprep.mubr.f32.mxu1 %v4361_v44 }
  0xd3   : > { %v600_v26 = vadd.f32 %v3165_v40, %v585_v21 }
  0xd5   : > { %3172 = vmatmul.mubr.msk.f32.gmra.mrb[12].mxu1 %vm449_vm0, %v599_v20 }
  0xd6   : > { %751 = vmatprep.mubr.f32.mxu1 %v4361_v44 }
  0xd9   : > { %3173 = vmatmul.mubr.msk.f32.gmra.mrb[14].mxu1 %vm449_vm0, %v600_v26 }
 0x190   : > { %v711_v30 = vpop.f32.mrb[0].mxu1 }
 0x191   : > { %v4590_v31 = vadd.f32 %v711_v30, %v614_v28  ;;  %v713_v32 = vpop.f32.mrb[1].mxu1 }
 0x192   : > { %v4596_v1 = vadd.f32 %v713_v32, %v618_v33 }
 0x193   : > { %3491 = vmatprep.mubr.msk.f32.mxu1 %vm790_vm1, %v4590_v31 }
 0x194   : > { %v717_v44 = vpop.f32.mrb[2].mxu1 }
 0x195   : > { %v4594_v34 = vadd.f32 %v717_v44, %v614_v28  ;;  %v719_v35 = vpop.f32.mrb[3].mxu1 }
 0x196   : > { %v4598_v36 = vadd.f32 %v719_v35, %v618_v33 }
 0x197   : > { %v4602_v37 = vpack.i.bf16 %v4594_v34, %v4590_v31 }
 0x198   : > { %v4133_v38 = vpack.i.bf16 %v4598_v36, %v4596_v1  ;;  %v4608_v39 = vpack.c.bf16 %v4598_v36, %v4596_v1  ;;  %v723_v40 = vpop.f32.mrb[4].mxu1 }
 0x199   : > { %4014 = vrot.lane.b32.xlu0 %v4602_v37, %s4362_s23  ;;  %v725_v0 = vpop.f32.mrb[5].mxu1  ;;  %v4614_v43 = vadd.f32 %v723_v40, %v614_v28 }
 0x19a   : > { %v4612_v41 = vadd.f32 %v725_v0, %v618_v33 }
 0x19c   : > { %v729_v42 = vpop.f32.mrb[6].mxu1 }
 0x19d   : > { %v4616_v45 = vadd.f32 %v729_v42, %v614_v28  ;;  %4034 = vrot.lane.b32.xlu0 %v4602_v37, %s4363_s24  ;;  %v731_v46 = vpop.f32.mrb[7].mxu1 }
 0x19e   : > { %v4620_v47 = vadd.f32 %v731_v46, %v618_v33 }
 0x19f   : > { %v4624_v48 = vpack.i.bf16 %v4616_v45, %v4614_v43 }
 0x1a0   : > { %v4630_v50 = vpack.c.bf16 %v4620_v47, %v4612_v41  ;;  %v735_v51 = vpop.f32.mrb[8].mxu1 }
 0x1a1   : > { %1026 = vrot.lane.b32.xlu0 %v4590_v31, %s4364_s28  ;;  %4019 = vrot.lane.b32.xlu1 %v4624_v48, %s4362_s23  ;;  %v737_v52 = vpop.f32.mrb[9].mxu1  ;;  %v4638_v2 = vadd.f32 %v735_v51, %v614_v28 }
 0x1a2   : > { %v4636_v53 = vadd.f32 %v737_v52, %v618_v33 }
 0x1a4   : > { %v741_v54 = vpop.f32.mrb[10].mxu1 }
 0x1a5   : > { %v4640_v55 = vadd.f32 %v741_v54, %v614_v28  ;;  %4044 = vrot.lane.b32.xlu0 %v4624_v48, %s4363_s24  ;;  %v743_v56 = vpop.f32.mrb[11].mxu1 }
 0x1a6   : > { %v4644_v57 = vadd.f32 %v743_v56, %v618_v33 }
 0x1a7   : > { %v4053_v58 = vpack.i.bf16 %v4640_v55, %v4638_v2 }
 0x1a8   : > { %v4143_v59 = vpack.i.bf16 %v4644_v57, %v4636_v53  ;;  %v4652_v60 = vpack.c.bf16 %v4644_v57, %v4636_v53  ;;  %v747_v61 = vpop.f32.mrb[12].mxu1 }
 0x1a9   : > { %4054 = vrot.lane.b32.xlu0 %v4053_v58, %s4363_s24  ;;  %4024 = vrot.lane.b32.xlu1 %v4053_v58, %s4362_s23  ;;  %v749_v62 = vpop.f32.mrb[13].mxu1  ;;  %v4658_v3 = vadd.f32 %v747_v61, %v614_v28 }
 0x1aa   : > { %v4656_v63 = vadd.f32 %v749_v62, %v618_v33 }
 0x1ac   : > { %v753_v10 = vpop.f32.mrb[14].mxu1 }
 0x1ad   : > { %v4660_v4 = vadd.f32 %v753_v10, %v614_v28  ;;  %1030 = vrot.lane.b32.xlu0 %v4614_v43, %s4364_s28  ;;  %v755_v5 = vpop.f32.mrb[15].mxu1 }
 0x1ae   : > { %v4664_v6 = vadd.f32 %v755_v5, %v618_v33 }
 0x1af   : > { %v4028_v7 = vpack.i.bf16 %v4660_v4, %v4658_v3 }
 0x1b0   : > { %v4672_v8 = vpack.c.bf16 %v4664_v6, %v4656_v63 }
 0x1b1   : > { %1034 = vrot.lane.b32.xlu0 %v4638_v2, %s4364_s28  ;;  %4029 = vrot.lane.b32.xlu1 %v4028_v7, %s4362_s23 }
 0x1b5   : > { %4064 = vrot.lane.b32.xlu0 %v4028_v7, %s4363_s24  ;;  %4039 = vrot.lane.b32.xlu1 %v4602_v37, %s4365_s29 }
 0x1b9   : > { %1038 = vrot.lane.b32.xlu0 %v4658_v3, %s4364_s28  ;;  %1028 = vrot.lane.b32.xlu1 %v4594_v34, %s4364_s28 }
 0x1bd   : > { %4074 = vrot.lane.b32.xlu0 %v4602_v37, %s4366_s14  ;;  %4049 = vrot.lane.b32.xlu1 %v4624_v48, %s4365_s29 }
 0x1c1   : > { %1600 = vrot.lane.b32.xlu0 %v4594_v34, %s4367_s15  ;;  %4059 = vrot.lane.b32.xlu1 %v4053_v58, %s4365_s29 }
 0x1c5   : > { %4084 = vrot.lane.b32.xlu0 %v4053_v58, %s4366_s14  ;;  %1032 = vrot.lane.b32.xlu1 %v4616_v45, %s4364_s28 }
 0x1c9   : > { %1604 = vrot.lane.b32.xlu0 %v4616_v45, %s4367_s15  ;;  %4069 = vrot.lane.b32.xlu1 %v4028_v7, %s4365_s29 }
 0x1cd   : > { %1606 = vrot.lane.b32.xlu0 %v4638_v2, %s4367_s15  ;;  %1036 = vrot.lane.b32.xlu1 %v4640_v55, %s4364_s28 }
 0x1d1   : > { %1610 = vrot.lane.b32.xlu0 %v4658_v3, %s4367_s15  ;;  %1040 = vrot.lane.b32.xlu1 %v4660_v4, %s4364_s28 }
 0x1d5   : > { %2001 = vrot.lane.b32.xlu0 %v4590_v31, %s4368_s16  ;;  %1598 = vrot.lane.b32.xlu1 %v4590_v31, %s4367_s15 }
 0x1d9   : > { %2005 = vrot.lane.b32.xlu0 %v4614_v43, %s4368_s16  ;;  %4079 = vrot.lane.b32.xlu1 %v4624_v48, %s4366_s14 }
 0x1dd   : > { %2009 = vrot.lane.b32.xlu0 %v4638_v2, %s4368_s16  ;;  %1602 = vrot.lane.b32.xlu1 %v4614_v43, %s4367_s15 }
 0x1e1   : > { %2013 = vrot.lane.b32.xlu0 %v4658_v3, %s4368_s16  ;;  %4089 = vrot.lane.b32.xlu1 %v4028_v7, %s4366_s14 }
 0x1e5   : > { %4094 = vrot.lane.b32.xlu0 %v4602_v37, %s4369_s17  ;;  %1608 = vrot.lane.b32.xlu1 %v4640_v55, %s4367_s15 }
 0x1e9   : > { %4104 = vrot.lane.b32.xlu0 %v4053_v58, %s4369_s17  ;;  %1612 = vrot.lane.b32.xlu1 %v4660_v4, %s4367_s15 }
 0x1ed   : > { %4109 = vrot.lane.b32.xlu0 %v4602_v37, %s4370_s18  ;;  %2003 = vrot.lane.b32.xlu1 %v4594_v34, %s4368_s16 }
 0x1f1   : > { %4114 = vrot.lane.b32.xlu0 %v4624_v48, %s4370_s18  ;;  %2007 = vrot.lane.b32.xlu1 %v4616_v45, %s4368_s16 }
 0x1f5   : > { %4129 = vrot.lane.b32.xlu0 %v4028_v7, %s4370_s18  ;;  %2011 = vrot.lane.b32.xlu1 %v4640_v55, %s4368_s16 }
 0x1f9   : > { %2015 = vrot.lane.b32.xlu1 %v4660_v4, %s4368_s16 }
 0x1fd   : > { %4099 = vrot.lane.b32.xlu1 %v4624_v48, %s4369_s17 }
 0x201   : > { %4119 = vrot.lane.b32.xlu1 %v4053_v58, %s4370_s18 }
 0x205   : > { %4124 = vrot.lane.b32.xlu1 %v4028_v7, %s4369_s17 }
 0x20b   : > { %v4015_v9 = vpop.permute.xlu0 %4014 }
 0x20c   : > { %v4017_v11 = vunpack.i.h.bf16 %v4015_v9  ;;  %v4016_v12 = vunpack.i.l.bf16 %v4015_v9 }
 0x20e   : > { %v3795_v18 = vpack.c.bf16 %v4017_v11, %v4016_v12 }
 0x20f   : > { %v4035_v15 = vpop.permute.xlu0 %4034 }
 0x210   : > { %v4037_v16 = vunpack.i.h.bf16 %v4035_v15  ;;  %v4036_v17 = vunpack.i.l.bf16 %v4035_v15  ;;  %3797 = vmatprep.subr.msk.bf16.mxu0 %vm4714_vm2, %v3795_v18 }
 0x211   : > { %3800 = vmatpush3.bf16.xpose.msk.msra.mxu0 %vm4714_vm2, %v3795_v18 }
 0x212   : > { %v3771_v19 = vpack.c.bf16 %v4037_v16, %v4036_v17 }
 0x213   : > { %v4020_v22 = vpop.permute.xlu1 %4019  ;;  %v1027_v20 = vpop.permute.xlu0 %1026 }
 0x214   : > { %v4022_v21 = vunpack.i.h.bf16 %v4020_v22  ;;  %v4021_v26 = vunpack.i.l.bf16 %v4020_v22  ;;  %3773 = vmatprep.subr.msk.bf16.mxu1 %vm4714_vm2, %v3771_v19  ;;  %3519 = vmatprep.mubr.msk.f32.mxu0 %vm790_vm1, %v1027_v20 }
 0x215   : > { %3776 = vmatpush3.bf16.xpose.msk.msra.mxu1 %vm4714_vm2, %v3771_v19 }
 0x216   : > { %v3801_v23 = vpack.c.bf16 %v4022_v21, %v4021_v26 }
 0x217   : > { %v4045_v24 = vpop.permute.xlu0 %4044 }
 0x218   : > { %v4047_v25 = vunpack.i.h.bf16 %v4045_v24  ;;  %v4046_v27 = vunpack.i.l.bf16 %v4045_v24  ;;  %3803 = vmatprep.subr.msk.bf16.mxu0 %vm4714_vm2, %v3801_v23 }
 0x219   : > { %3806 = vmatpush3.bf16.xpose.msk.msra.mxu0 %vm4714_vm2, %v3801_v23 }
 0x21a   : > { %v3777_v28 = vpack.c.bf16 %v4047_v25, %v4046_v27 }
 0x21b   : > { %v4025_v29 = vpop.permute.xlu1 %4024  ;;  %v4055_v30 = vpop.permute.xlu0 %4054 }
 0x21c   : > { %v4027_v31 = vunpack.i.h.bf16 %v4025_v29  ;;  %v4026_v32 = vunpack.i.l.bf16 %v4025_v29  ;;  %v4057_v33 = vunpack.i.h.bf16 %v4055_v30  ;;  %v4056_v44 = vunpack.i.l.bf16 %v4055_v30  ;;  %3779 = vmatprep.subr.msk.bf16.mxu1 %vm4714_vm2, %v3777_v28 }
 0x21d   : > { %3782 = vmatpush3.bf16.xpose.msk.msra.mxu1 %vm4714_vm2, %v3777_v28 }
 0x21e   : > { %v3807_v35 = vpack.c.bf16 %v4027_v31, %v4026_v32  ;;  %v3783_v37 = vpack.c.bf16 %v4057_v33, %v4056_v44 }
 0x21f   : > { %v1031_v40 = vpop.permute.xlu0 %1030 }
 0x220   : > { %3785 = vmatprep.subr.msk.bf16.mxu1 %vm4714_vm2, %v3783_v37  ;;  %3809 = vmatprep.subr.msk.bf16.mxu0 %vm4714_vm2, %v3807_v35 }
 0x221   : > { %3812 = vmatpush3.bf16.xpose.msk.msra.mxu0 %vm4714_vm2, %v3807_v35 }
 0x223   : > { %v4030_v0 = vpop.permute.xlu1 %4029  ;;  %v1035_v42 = vpop.permute.xlu0 %1034 }
 0x224   : > { %v4032_v46 = vunpack.i.h.bf16 %v4030_v0  ;;  %v4031_v48 = vunpack.i.l.bf16 %v4030_v0 }
 0x225   : > { %3788 = vmatpush3.bf16.xpose.msk.msra.mxu1 %vm4714_vm2, %v3783_v37 }
 0x226   : > { %v3813_v51 = vpack.c.bf16 %v4032_v46, %v4031_v48 }
 0x227   : > { %v4040_v52 = vpop.permute.xlu1 %4039  ;;  %v4065_v54 = vpop.permute.xlu0 %4064 }
 0x228   : > { %v4042_v56 = vunpack.i.h.bf16 %v4040_v52  ;;  %v4041_v58 = vunpack.i.l.bf16 %v4040_v52  ;;  %v4067_v61 = vunpack.i.h.bf16 %v4065_v54  ;;  %v4066_v62 = vunpack.i.l.bf16 %v4065_v54  ;;  %3815 = vmatprep.subr.msk.bf16.mxu0 %vm4714_vm2, %v3813_v51 }
 0x229   : > { %3818 = vmatpush3.bf16.xpose.msk.msra.mxu0 %vm4714_vm2, %v3813_v51 }
 0x22a   : > { %v3851_v10 = vpack.c.bf16 %v4042_v56, %v4041_v58  ;;  %v3789_v5 = vpack.c.bf16 %v4067_v61, %v4066_v62 }
 0x22b   : > { %v1029_v7 = vpop.permute.xlu1 %1028  ;;  %v1039_v9 = vpop.permute.xlu0 %1038 }
 0x22c   : > { %3791 = vmatprep.subr.msk.bf16.mxu1 %vm4714_vm2, %v3789_v5  ;;  %3853 = vmatprep.subr.msk.bf16.mxu0 %vm4714_vm2, %v3851_v10 }
 0x22d   : > { %3794 = vmatpush3.bf16.xpose.msk.msra.mxu1 %vm4714_vm2, %v3789_v5 }
 0x22f   : > { %v4050_v11 = vpop.permute.xlu1 %4049  ;;  %v4075_v12 = vpop.permute.xlu0 %4074 }
 0x230   : > { %v4052_v18 = vunpack.i.h.bf16 %v4050_v11  ;;  %v4051_v15 = vunpack.i.l.bf16 %v4050_v11  ;;  %3520 = vmatmul.mubr.msk.f32.vlgmr.msra.gmra.mrb[0].mxu0 %vm790_vm1, %v1029_v7  ;;  %v4076_v29 = vunpack.i.l.bf16 %v4075_v12 }
 0x231   : > { %3522 = vmatprep.mubr.msk.f32.mxu0 %vm790_vm1, %v1031_v40  ;;  %3856 = vmatpush3.bf16.xpose.msk.msra.mxu0 %vm4714_vm2, %v3851_v10 }
 0x232   : > { %v3857_v16 = vpack.c.bf16 %v4052_v18, %v4051_v15 }
 0x233   : > { %v4060_v17 = vpop.permute.xlu1 %4059  ;;  %v1601_v19 = vpop.permute.xlu0 %1600 }
 0x234   : > { %3492 = vmatmul.mubr.msk.f32.vlgmr.msra.gmra.mrb[16].mxu1 %vm790_vm1, %v4594_v34  ;;  %3859 = vmatprep.subr.msk.bf16.mxu0 %vm4714_vm2, %v3857_v16  ;;  %v4062_v22 = vunpack.i.h.bf16 %v4060_v17  ;;  %v4061_v20 = vunpack.i.l.bf16 %v4060_v17 }
 0x235   : > { %3494 = vmatprep.mubr.msk.f32.mxu1 %vm790_vm1, %v4614_v43 }
 0x236   : > { %v3863_v23 = vpack.c.bf16 %v4062_v22, %v4061_v20 }
 0x237   : > { %v1033_v21 = vpop.permute.xlu1 %1032  ;;  %v4085_v26 = vpop.permute.xlu0 %4084 }
 0x238   : > { %3495 = vmatmul.mubr.msk.f32.gmra.mrb[18].mxu1 %vm790_vm1, %v4616_v45  ;;  %3523 = vmatmul.mubr.msk.f32.gmra.mrb[2].mxu0 %vm790_vm1, %v1033_v21  ;;  %v4087_v48 = vunpack.i.h.bf16 %v4085_v26  ;;  %v4086_v51 = vunpack.i.l.bf16 %v4085_v26 }
 0x239   : > { %3497 = vmatprep.mubr.msk.f32.mxu1 %vm790_vm1, %v4638_v2  ;;  %3525 = vmatprep.mubr.msk.f32.mxu0 %vm790_vm1, %v1035_v42 }
 0x23a   : > { %3862 = vmatpush3.bf16.xpose.msk.msra.mxu0 %vm4714_vm2, %v3857_v16  ;;  %v3903_v61 = vpack.c.bf16 %v4087_v48, %v4086_v51  ;;  %v3193_v48 = vld [vmem:[%s5667_s6 + $0x58] sm:$0xff] }
 0x23b   : > { %3865 = vmatprep.subr.msk.bf16.mxu0 %vm4714_vm2, %v3863_v23  ;;  %v4070_v34 = vpop.permute.xlu1 %4069  ;;  %v1605_v43 = vpop.permute.xlu0 %1604 }
 0x23c   : > { %3498 = vmatmul.mubr.msk.f32.gmra.mrb[20].mxu1 %vm790_vm1, %v4640_v55  ;;  %v4072_v45 = vunpack.i.h.bf16 %v4070_v34  ;;  %v4071_v24 = vunpack.i.l.bf16 %v4070_v34 }
 0x23d   : > { %3500 = vmatprep.mubr.msk.f32.mxu1 %vm790_vm1, %v4658_v3  ;;  %v4077_v3 = vunpack.i.h.bf16 %v4075_v12 }
 0x23e   : > { %v3869_v27 = vpack.c.bf16 %v4072_v45, %v4071_v24 }
 0x23f   : > { %v1037_v25 = vpop.permute.xlu1 %1036  ;;  %v1607_v2 = vpop.permute.xlu0 %1606 }
 0x240   : > { %3501 = vmatmul.mubr.msk.f32.gmra.mrb[22].mxu1 %vm790_vm1, %v4660_v4  ;;  %3526 = vmatmul.mubr.msk.f32.gmra.mrb[4].mxu0 %vm790_vm1, %v1037_v25  ;;  %v3891_v4 = vpack.c.bf16 %v4077_v3, %v4076_v29  ;;  %v3190_v3 = vld [vmem:[%s5667_s6 + $0x40] sm:$0xff] }
 0x241   : > { %3528 = vmatprep.mubr.msk.f32.mxu0 %vm790_vm1, %v1039_v9 }
 0x242   : > { %3868 = vmatpush3.bf16.xpose.msk.msra.mxu0 %vm4714_vm2, %v3863_v23 }
 0x243   : > { %3871 = vmatprep.subr.msk.bf16.mxu0 %vm4714_vm2, %v3869_v27  ;;  %v1041_v55 = vpop.permute.xlu1 %1040  ;;  %v1611_v28 = vpop.permute.xlu0 %1610 }
 0x244   : > { %3529 = vmatmul.mubr.msk.f32.gmra.mrb[6].mxu0 %vm790_vm1, %v1041_v55 }
 0x247   : > { %v1599_v30 = vpop.permute.xlu1 %1598  ;;  %v2002_v31 = vpop.permute.xlu0 %2001 }
 0x248   : > { %3603 = vmatprep.mubr.msk.f32.mxu0 %vm790_vm1, %v1599_v30 }
 0x24a   : > { %3874 = vmatpush3.bf16.xpose.msk.msra.mxu0 %vm4714_vm2, %v3869_v27 }
 0x24b   : > { %3893 = vmatprep.subr.msk.bf16.mxu0 %vm4714_vm2, %v3891_v4  ;;  %v4080_v32 = vpop.permute.xlu1 %4079  ;;  %v2006_v33 = vpop.permute.xlu0 %2005 }
 0x24c   : > { %v4082_v44 = vunpack.i.h.bf16 %v4080_v32  ;;  %v4081_v35 = vunpack.i.l.bf16 %v4080_v32  ;;  %v759_v32 = vld [vmem:[%s5667_s6 + $0x8] sm:$0xff] }
 0x24e   : > { %v3897_v0 = vpack.c.bf16 %v4082_v44, %v4081_v35  ;;  %v758_v44 = vld [vmem:[%s5667_s6] sm:$0xff] }
 0x24f   : > { %v1603_v37 = vpop.permute.xlu1 %1602  ;;  %v2010_v40 = vpop.permute.xlu0 %2009 }
 0x251   : > { %3604 = vmatmul.mubr.msk.f32.vlgmr.msra.gmra.mrb[8].mxu0 %vm790_vm1, %v1601_v19 }
 0x252   : > { %3606 = vmatprep.mubr.msk.f32.mxu0 %vm790_vm1, %v1603_v37  ;;  %3896 = vmatpush3.bf16.xpose.msk.msra.mxu0 %vm4714_vm2, %v3891_v4 }
 0x253   : > { %3899 = vmatprep.subr.msk.bf16.mxu0 %vm4714_vm2, %v3897_v0  ;;  %v4090_v42 = vpop.permute.xlu1 %4089  ;;  %v2014_v46 = vpop.permute.xlu0 %2013 }
 0x254   : > { %v4092_v5 = vunpack.i.h.bf16 %v4090_v42  ;;  %v4091_v7 = vunpack.i.l.bf16 %v4090_v42 }
 0x255   : > { %3607 = vmatmul.mubr.msk.f32.gmra.mrb[10].mxu0 %vm790_vm1, %v1605_v43 }
 0x256   : > { %3609 = vmatprep.mubr.msk.f32.mxu0 %vm790_vm1, %v1607_v2  ;;  %v3909_v11 = vpack.c.bf16 %v4092_v5, %v4091_v7  ;;  %v3192_v5 = vld [vmem:[%s5667_s6 + $0x50] sm:$0xff] }
 0x257   : > { %v1609_v52 = vpop.permute.xlu1 %1608  ;;  %v4095_v54 = vpop.permute.xlu0 %4094 }
 0x258   : > { %v4097_v56 = vunpack.i.h.bf16 %v4095_v54  ;;  %v4096_v58 = vunpack.i.l.bf16 %v4095_v54 }
 0x259   : > { %3610 = vmatmul.mubr.msk.f32.gmra.mrb[12].mxu0 %vm790_vm1, %v1609_v52 }
 0x25a   : > { %v3819_v62 = vpack.c.bf16 %v4097_v56, %v4096_v58  ;;  %3612 = vmatprep.mubr.msk.f32.mxu0 %vm790_vm1, %v1611_v28  ;;  %3902 = vmatpush3.bf16.xpose.msk.msra.mxu0 %vm4714_vm2, %v3897_v0  ;;  %v3191_v28 = vld [vmem:[%s5667_s6 + $0x48] sm:$0xff] }
 0x25b   : > { %3905 = vmatprep.subr.msk.bf16.mxu0 %vm4714_vm2, %v3903_v61  ;;  %v1613_v10 = vpop.permute.xlu1 %1612  ;;  %v4105_v16 = vpop.permute.xlu0 %4104 }
 0x25c   : > { %3820 = vmatprep.subr.bf16.mxu1 %v3819_v62  ;;  %v4107_v19 = vunpack.i.h.bf16 %v4105_v16  ;;  %v4106_v22 = vunpack.i.l.bf16 %v4105_v16  ;;  %v3195_v16 = vld [vmem:[%s5667_s6 + $0x68] sm:$0xff] }
 0x25d   : > { %3613 = vmatmul.mubr.msk.f32.gmra.mrb[14].mxu0 %vm790_vm1, %v1613_v10  ;;  %3822 = vmatpush3.bf16.msra.mxu1 %v3819_v62 }
 0x25e   : > { %3659 = vmatprep.mubr.msk.f32.mxu0 %vm790_vm1, %v2002_v31  ;;  %v3827_v34 = vpack.c.bf16 %v4107_v19, %v4106_v22  ;;  %v763_v19 = vld [vmem:[%s5667_s6 + $0x28] sm:$0xff] }
 0x25f   : > { %v2004_v9 = vpop.permute.xlu1 %2003  ;;  %v4110_v43 = vpop.permute.xlu0 %4109 }
 0x260   : > { %v4112_v45 = vunpack.i.h.bf16 %v4110_v43  ;;  %v4111_v24 = vunpack.i.l.bf16 %v4110_v43 }
 0x262   : > { %3908 = vmatpush3.bf16.xpose.msk.msra.mxu0 %vm4714_vm2, %v3903_v61  ;;  %v4821_v55 = vpack.c.bf16 %v4112_v45, %v4111_v24 }
 0x263   : > { %3911 = vmatprep.subr.msk.bf16.mxu0 %vm4714_vm2, %v3909_v11  ;;  %v2008_v12 = vpop.permute.xlu1 %2007 }
 0x267   : > { %v2012_v18 = vpop.permute.xlu1 %2011 }
 0x26a   : > { %3914 = vmatpush3.bf16.xpose.msk.msra.mxu0 %vm4714_vm2, %v3909_v11 }
 0x26b   : > { %v2016_v15 = vpop.permute.xlu1 %2015 }
 0x26f   : > { %v4100_v17 = vpop.permute.xlu1 %4099 }
 0x270   : > { %v4102_v20 = vunpack.i.h.bf16 %v4100_v17  ;;  %v4101_v21 = vunpack.i.l.bf16 %v4100_v17 }
 0x271   : > { %3660 = vmatmul.mubr.msk.f32.vlgmr.msra.gmra.mrb[16].mxu0 %vm790_vm1, %v2004_v9 }
 0x272   : > { %3662 = vmatprep.mubr.msk.f32.mxu0 %vm790_vm1, %v2006_v33  ;;  %v3823_v26 = vpack.c.bf16 %v4102_v20, %v4101_v21 }
 0x273   : > { %v4815_v23 = vpop.permute.xlu1 %4119 }
 0x274   : > { %3824 = vmatprep.subr.bf16.mxu1 %v3823_v26 }
 0x275   : > { %3663 = vmatmul.mubr.msk.f32.gmra.mrb[18].mxu0 %vm790_vm1, %v2008_v12  ;;  %3826 = vmatpush3.bf16.msra.mxu1 %v3823_v26 }
 0x276   : > { %3665 = vmatprep.mubr.msk.f32.mxu0 %vm790_vm1, %v2010_v40  ;;  %3828 = vmatprep.subr.bf16.mxu1 %v3827_v34 }
 0x277   : > { %v4125_v13 = vpop.permute.xlu1 %4124 }
 0x278   : > { %v4127_v25 = vunpack.i.h.bf16 %v4125_v13  ;;  %v4126_v2 = vunpack.i.l.bf16 %v4125_v13  ;;  %v3194_v13 = vld [vmem:[%s5667_s6 + $0x60] sm:$0xff] }
 0x279   : > { %3666 = vmatmul.mubr.msk.f32.gmra.mrb[20].mxu0 %vm790_vm1, %v2012_v18  ;;  %3830 = vmatpush3.bf16.msra.mxu1 %v3827_v34  ;;  %v760_v18 = vld [vmem:[%s5667_s6 + $0x10] sm:$0xff] }
 0x27a   : > { %v3831_v27 = vpack.c.bf16 %v4127_v25, %v4126_v2  ;;  %3668 = vmatprep.mubr.msk.f32.mxu0 %vm790_vm1, %v2014_v46  ;;  %v761_v46 = vld [vmem:[%s5667_s6 + $0x18] sm:$0xff] }
 0x27b   : > { %v3197_v2 = vld [vmem:[%s5667_s6 + $0x78] sm:$0xff] }
 0x27c   : > { %3832 = vmatprep.subr.bf16.mxu1 %v3831_v27 }
 0x27d   : > { %3669 = vmatmul.mubr.msk.f32.gmra.mrb[22].mxu0 %vm790_vm1, %v2016_v15  ;;  %3834 = vmatpush3.bf16.msra.mxu1 %v3831_v27 }
 0x27e   : > { %3836 = vmatprep.subr.bf16.mxu1 %v4821_v55 }
 0x303   : > { %v3521_v29 = vpop.f32.mrb[0].mxu0 }
 0x304   : > { %v4831_v30 = vadd.f32 %v3521_v29, %v3191_v28  ;;  %v1156_v31 = vpop.f32.mrb[1].mxu0 }
 0x305   : > { %v4833_v4 = vadd.f32 %v3190_v3, %v1156_v31  ;;  %v762_v3 = vld [vmem:[%s5667_s6 + $0x20] sm:$0xff] }
 0x306   : > { %v1198_v33 = vsel %vm928_vm3, %v4831_v30, -inf }
 0x307   : > { %v3493_v35 = vpop.f32.mrb[16].mxu1  ;;  %1199 = vmax.xlane.f32.xlu1 %v1198_v33  ;;  %v1195_v37 = vsel %vm928_vm3, %v4833_v4, -inf }
 0x308   : > { %v4845_v40 = vadd.f32 %v3493_v35, %v759_v32  ;;  %v889_v0 = vpop.f32.mrb[17].mxu1  ;;  %1196 = vmax.xlane.f32.xlu0 %v1195_v37  ;;  %v3196_v37 = vld [vmem:[%s5667_s6 + $0x70] sm:$0xff] }
 0x309   : > { %v4847_v42 = vadd.f32 %v889_v0, %v758_v44  ;;  %v765_v44 = vld [vmem:[%s5667_s6 + $0x38] sm:$0xff] }
 0x30a   : > { %v932_v51 = vsel %vm928_vm3, %v4845_v40, -inf }
 0x30b   : > { %v3496_v52 = vpop.f32.mrb[18].mxu1  ;;  %933 = vmax.xlane.f32.xlu1 %v932_v51  ;;  %v3524_v54 = vpop.f32.mrb[2].mxu0  ;;  %v929_v56 = vsel %vm928_vm3, %v4847_v42, -inf }
 0x30c   : > { %v4859_v58 = vadd.f32 %v3496_v52, %v761_v46  ;;  %v4861_v61 = vadd.f32 %v3524_v54, %v3193_v48  ;;  %v899_v62 = vpop.f32.mrb[19].mxu1  ;;  %v1166_v10 = vpop.f32.mrb[3].mxu0  ;;  %930 = vmax.xlane.f32.xlu0 %v929_v56  ;;  %v764_v52 = vld [vmem:[%s5667_s6 + $0x30] sm:$0xff]  ;;  %v3231_v56 = vld [vmem:[%s5667_s6 + $0x88] sm:$0xff] }
 0x30d   : > { %v4870_v11 = vadd.f32 %v3192_v5, %v1166_v10  ;;  %v4878_v17 = vadd.f32 %v899_v62, %v760_v18  ;;  %v3233_v18 = vld [vmem:[%s5667_s6 + $0x98] sm:$0xff] }
 0x30e   : > { %v938_v7 = vsel %vm928_vm3, %v4859_v58, -inf  ;;  %v1204_v9 = vsel %vm928_vm3, %v4861_v61, -inf }
 0x30f   : > { %v3499_v12 = vpop.f32.mrb[20].mxu1  ;;  %939 = vmax.xlane.f32.xlu1 %v938_v7  ;;  %v1201_v21 = vsel %vm928_vm3, %v4870_v11, -inf  ;;  %v935_v28 = vsel %vm928_vm3, %v4878_v17, -inf  ;;  %v3230_v7 = vld [vmem:[%s5667_s6 + $0x80] sm:$0xff] }
 0x310   : > { %v909_v15 = vpop.f32.mrb[21].mxu1  ;;  %1205 = vmax.xlane.f32.xlu0 %v1204_v9  ;;  %v4890_v45 = vadd.f32 %v3499_v12, %v763_v19 }
 0x311   : > { %v4908_v33 = vadd.f32 %v909_v15, %v762_v3 }
 0x312   : > { %v944_v32 = vsel %vm928_vm3, %v4890_v45, -inf }
 0x313   : > { %v3502_v22 = vpop.f32.mrb[22].mxu1  ;;  %v3527_v20 = vpop.f32.mrb[4].mxu0  ;;  %v941_v51 = vsel %vm928_vm3, %v4908_v33, -inf }
 0x314   : > { %v4885_v26 = vadd.f32 %v3527_v20, %v3195_v16  ;;  %v919_v34 = vpop.f32.mrb[23].mxu1  ;;  %v1176_v43 = vpop.f32.mrb[5].mxu0  ;;  %1202 = vmax.xlane.f32.xlu0 %v1201_v21  ;;  %v4918_v0 = vadd.f32 %v3502_v22, %v765_v44  ;;  %v3232_v20 = vld [vmem:[%s5667_s6 + $0x90] sm:$0xff] }
 0x315   : > { %v4894_v25 = vadd.f32 %v3194_v13, %v1176_v43  ;;  %v4934_v62 = vadd.f32 %v919_v34, %v764_v52  ;;  %v3235_v43 = vld [vmem:[%s5667_s6 + $0xa8] sm:$0xff] }
 0x316   : > { %v1210_v24 = vsel %vm928_vm3, %v4885_v26, -inf  ;;  %v950_v54 = vsel %vm928_vm3, %v4918_v0, -inf }
 0x317   : > { %1211 = vmax.xlane.f32.xlu1 %v1210_v24  ;;  %v3530_v27 = vpop.f32.mrb[6].mxu0  ;;  %v1207_v35 = vsel %vm928_vm3, %v4894_v25, -inf  ;;  %v947_v19 = vsel %vm928_vm3, %v4934_v62, -inf }
 0x318   : > { %v1186_v29 = vpop.f32.mrb[7].mxu0  ;;  %936 = vmax.xlane.f32.xlu0 %v935_v28  ;;  %v4904_v31 = vadd.f32 %v3530_v27, %v3197_v2  ;;  %v3234_v28 = vld [vmem:[%s5667_s6 + $0xa0] sm:$0xff] }
 0x319   : > { %v4922_v48 = vadd.f32 %v3196_v37, %v1186_v29 }
 0x31a   : > { %v1216_v46 = vsel %vm928_vm3, %v4904_v31, -inf }
 0x31b   : > { %945 = vmax.xlane.f32.xlu1 %v944_v32  ;;  %v1213_v10 = vsel %vm928_vm3, %v4922_v48, -inf  ;;  %v3237_v32 = vld [vmem:[%s5667_s6 + $0xb8] sm:$0xff] }
 0x31c   : > { %1208 = vmax.xlane.f32.xlu0 %v1207_v35 }
 0x31f   : > { %1217 = vmax.xlane.f32.xlu1 %v1216_v46 }
 0x320   : > { %942 = vmax.xlane.f32.xlu0 %v941_v51  ;;  %v3236_v51 = vld [vmem:[%s5667_s6 + $0xb0] sm:$0xff] }
 0x323   : > { %951 = vmax.xlane.f32.xlu1 %v950_v54 }
 0x324   : > { %v3605_v5 = vpop.f32.mrb[8].mxu0  ;;  %1214 = vmax.xlane.f32.xlu0 %v1213_v10 }
 0x325   : > { %v4941_v9 = vadd.f32 %v3605_v5, %v3231_v56  ;;  %v1728_v12 = vpop.f32.mrb[9].mxu0 }
 0x326   : > { %v4946_v15 = vadd.f32 %v3230_v7, %v1728_v12  ;;  %v3263_v12 = vld [vmem:[%s5667_s6 + $0xc8] sm:$0xff] }
 0x327   : > { %v1770_v16 = vsel %vm928_vm3, %v4941_v9, -inf }
 0x328   : > { %1771 = vmax.xlane.f32.xlu1 %v1770_v16  ;;  %v3608_v22 = vpop.f32.mrb[10].mxu0  ;;  %948 = vmax.xlane.f32.xlu0 %v947_v19  ;;  %v1767_v2 = vsel %vm928_vm3, %v4946_v15, -inf }
 0x329   : > { %v4955_v21 = vadd.f32 %v3608_v22, %v3233_v18  ;;  %v1738_v34 = vpop.f32.mrb[11].mxu0  ;;  %v3262_v18 = vld [vmem:[%s5667_s6 + $0xc0] sm:$0xff] }
 0x32a   : > { %v4960_v13 = vadd.f32 %v3232_v20, %v1738_v34  ;;  %v3265_v34 = vld [vmem:[%s5667_s6 + $0xd8] sm:$0xff] }
 0x32b   : > { %v1776_v24 = vsel %vm928_vm3, %v4955_v21, -inf }
 0x32c   : > { %1777 = vmax.xlane.f32.xlu1 %v1776_v24  ;;  %v3611_v27 = vpop.f32.mrb[12].mxu0  ;;  %1768 = vmax.xlane.f32.xlu0 %v1767_v2  ;;  %v1773_v37 = vsel %vm928_vm3, %v4960_v13, -inf  ;;  %v3264_v24 = vld [vmem:[%s5667_s6 + $0xd0] sm:$0xff] }
 0x32d   : > { %v4969_v3 = vadd.f32 %v3611_v27, %v3235_v43  ;;  %v1748_v29 = vpop.f32.mrb[13].mxu0 }
 0x32e   : > { %v4974_v44 = vadd.f32 %v3234_v28, %v1748_v29 }
 0x32f   : > { %v1782_v35 = vsel %vm928_vm3, %v4969_v3, -inf }
 0x330   : > { %1783 = vmax.xlane.f32.xlu1 %v1782_v35  ;;  %v3614_v46 = vpop.f32.mrb[14].mxu0  ;;  %1774 = vmax.xlane.f32.xlu0 %v1773_v37  ;;  %v1779_v5 = vsel %vm928_vm3, %v4974_v44, -inf  ;;  %v3267_v35 = vld [vmem:[%s5667_s6 + $0xe8] sm:$0xff] }
 0x331   : > { %v4983_v52 = vadd.f32 %v3614_v46, %v3237_v32  ;;  %v1758_v54 = vpop.f32.mrb[15].mxu0  ;;  %v3266_v46 = vld [vmem:[%s5667_s6 + $0xe0] sm:$0xff] }
 0x332   : > { %v4985_v56 = vadd.f32 %v3236_v51, %v1758_v54 }
 0x333   : > { %v1788_v10 = vsel %vm928_vm3, %v4983_v52, -inf }
 0x334   : > { %1789 = vmax.xlane.f32.xlu1 %v1788_v10  ;;  %1780 = vmax.xlane.f32.xlu0 %v1779_v5  ;;  %v1785_v7 = vsel %vm928_vm3, %v4985_v56, -inf }
 0x338   : > { %1786 = vmax.xlane.f32.xlu0 %v1785_v7 }
 0x344   : > { %v3661_v16 = vpop.f32.mrb[16].mxu0 }
 0x345   : > { %v4999_v19 = vadd.f32 %v3661_v16, %v3263_v12  ;;  %v2131_v22 = vpop.f32.mrb[17].mxu0  ;;  %v3269_v12 = vld [vmem:[%s5667_s6 + $0xf8] sm:$0xff]  ;;  %v3268_v16 = vld [vmem:[%s5667_s6 + $0xf0] sm:$0xff] }
 0x346   : > { %v5001_v20 = vadd.f32 %v3262_v18, %v2131_v22 }
 0x347   : > { %v2173_v43 = vsel %vm928_vm3, %v4999_v19, -inf }
 0x348   : > { %2174 = vmax.xlane.f32.xlu1 %v2173_v43  ;;  %v3664_v2 = vpop.f32.mrb[18].mxu0  ;;  %v2170_v27 = vsel %vm928_vm3, %v5001_v20, -inf }
 0x349   : > { %v5013_v28 = vadd.f32 %v3664_v2, %v3265_v34  ;;  %v2141_v29 = vpop.f32.mrb[19].mxu0  ;;  %2171 = vmax.xlane.f32.xlu0 %v2170_v27 }
 0x34a   : > { %v5015_v32 = vadd.f32 %v3264_v24, %v2141_v29 }
 0x34b   : > { %v2179_v37 = vsel %vm928_vm3, %v5013_v28, -inf }
 0x34c   : > { %2180 = vmax.xlane.f32.xlu1 %v2179_v37  ;;  %v3667_v51 = vpop.f32.mrb[20].mxu0  ;;  %v2176_v54 = vsel %vm928_vm3, %v5015_v32, -inf }
 0x34d   : > { %v5027_v10 = vadd.f32 %v3667_v51, %v3267_v35  ;;  %v2151_v5 = vpop.f32.mrb[21].mxu0  ;;  %2177 = vmax.xlane.f32.xlu0 %v2176_v54  ;;  %v5049_v35 = vpop.permute.xlu0 %4114 }
 0x34e   : > { %v5029_v7 = vadd.f32 %v3266_v46, %v2151_v5  ;;  %v4117_v57 = vunpack.i.h.bf16 %v5049_v35 }
 0x34f   : > { %v2185_v18 = vsel %vm928_vm3, %v5027_v10, -inf }
 0x350   : > { %2186 = vmax.xlane.f32.xlu1 %v2185_v18  ;;  %v3670_v22 = vpop.f32.mrb[22].mxu0  ;;  %v2182_v34 = vsel %vm928_vm3, %v5029_v7, -inf }
 0x351   : > { %v5041_v43 = vadd.f32 %v3670_v22, %v3269_v12  ;;  %v2161_v24 = vpop.f32.mrb[23].mxu0  ;;  %2183 = vmax.xlane.f32.xlu0 %v2182_v34  ;;  %v5051_v37 = vpop.permute.xlu0 %4129 }
 0x352   : > { %v5043_v2 = vadd.f32 %v3268_v16, %v2161_v24 }
 0x353   : > { %v2191_v27 = vsel %vm928_vm3, %v5041_v43, -inf }
 0x354   : > { %2192 = vmax.xlane.f32.xlu1 %v2191_v27  ;;  %v2188_v29 = vsel %vm928_vm3, %v5043_v2, -inf }
 0x355   : > { %2189 = vmax.xlane.f32.xlu0 %v2188_v29 }
 0x394   : > { %v1200_v46 = vpop.xlane.xlu1 %1199 }
 0x395   : > { %v1220_v51 = vsub.f32 %v4831_v30, %v1200_v46  ;;  %v1197_v54 = vpop.xlane.xlu0 %1196 }
 0x396   : > { %v1219_v5 = vsub.f32 %v4833_v4, %v1197_v54 }
 0x397   : > { %v1229_v12 = vmul.f32 1.442695, %v1220_v51 }
 0x398   : > { %v1227_v18 = vmul.f32 1.442695, %v1219_v5  ;;  %v934_v16 = vpop.xlane.xlu1 %933 }
 0x399   : > { %4169 = vpow2.f32 %v1229_v12  ;;  %v954_v22 = vsub.f32 %v4845_v40, %v934_v16  ;;  %v931_v34 = vpop.xlane.xlu0 %930 }
 0x39a   : > { %4171 = vpow2.f32 %v1227_v18  ;;  %v953_v24 = vsub.f32 %v4847_v42, %v931_v34 }
 0x39b   : > { %v963_v27 = vmul.f32 1.442695, %v954_v22 }
 0x39c   : > { %v961_v29 = vmul.f32 1.442695, %v953_v24  ;;  %v940_v14 = vpop.xlane.xlu1 %939 }
 0x39d   : > { %4173 = vpow2.f32 %v963_v27  ;;  %v956_v49 = vsub.f32 %v4859_v58, %v940_v14  ;;  %v1206_v30 = vpop.xlane.xlu0 %1205 }
 0x39e   : > { %4175 = vpow2.f32 %v961_v29  ;;  %v1222_v4 = vsub.f32 %v4861_v61, %v1206_v30 }
 0x39f   : > { %v967_v46 = vmul.f32 1.442695, %v956_v49 }
 0x3a0   : > { %v1233_v51 = vmul.f32 1.442695, %v1222_v4 }
 0x3a1   : > { %v1203_v54 = vpop.xlane.xlu0 %1202 }
 0x3a2   : > { %4177 = vpow2.f32 %v1233_v51  ;;  %v1221_v40 = vsub.f32 %v4870_v11, %v1203_v54 }
 0x3a3   : > { %v5060_v5 = vpop.eup %4169  ;;  %4179 = vpow2.f32 %v967_v46 }
 0x3a4   : > { %v5062_v12 = vpop.eup %4171  ;;  %v1231_v42 = vmul.f32 1.442695, %v1221_v40  ;;  %v1212_v18 = vpop.xlane.xlu1 %1211  ;;  %v1246_v14 = vsel %vm928_vm3, %v5060_v5, 0.0 }
 0x3a5   : > { %v1224_v58 = vsub.f32 %v4885_v26, %v1212_v18  ;;  %1247 = vadd.xlane.f32.xlu1 %v1246_v14  ;;  %v937_v61 = vpop.xlane.xlu0 %936  ;;  %v1243_v49 = vsel %vm928_vm3, %v5062_v12, 0.0 }
 0x3a6   : > { %4181 = vpow2.f32 %v1231_v42  ;;  %v955_v11 = vsub.f32 %v4878_v17, %v937_v61  ;;  %1244 = vadd.xlane.f32.xlu0 %v1243_v49 }
 0x3a7   : > { %v5070_v16 = vpop.eup %4173  ;;  %v1237_v34 = vmul.f32 1.442695, %v1224_v58 }
 0x3a8   : > { %v5072_v22 = vpop.eup %4175  ;;  %v965_v24 = vmul.f32 1.442695, %v955_v11  ;;  %v946_v27 = vpop.xlane.xlu1 %945  ;;  %v980_v29 = vsel %vm928_vm3, %v5070_v16, 0.0 }
 0x3a9   : > { %v958_v26 = vsub.f32 %v4890_v45, %v946_v27  ;;  %981 = vadd.xlane.f32.xlu1 %v980_v29  ;;  %v1209_v30 = vpop.xlane.xlu0 %1208  ;;  %v977_v4 = vsel %vm928_vm3, %v5072_v22, 0.0 }
 0x3aa   : > { %4183 = vpow2.f32 %v965_v24  ;;  %v1223_v17 = vsub.f32 %v4894_v25, %v1209_v30  ;;  %978 = vadd.xlane.f32.xlu0 %v977_v4 }
 0x3ab   : > { %4185 = vpow2.f32 %v1237_v34  ;;  %v971_v51 = vmul.f32 1.442695, %v958_v26 }
 0x3ac   : > { %v5080_v46 = vpop.eup %4177  ;;  %v1235_v54 = vmul.f32 1.442695, %v1223_v17  ;;  %v1218_v40 = vpop.xlane.xlu1 %1217 }
 0x3ad   : > { %v1226_v42 = vsub.f32 %v4904_v31, %v1218_v40  ;;  %v5083_v18 = vpop.xlane.xlu0 %942  ;;  %v1252_v45 = vsel %vm928_vm3, %v5080_v46, 0.0  ;;  %v5087_v14 = vpop.eup %4179 }
 0x3ae   : > { %4187 = vpow2.f32 %v1235_v54  ;;  %1253 = vadd.xlane.f32.xlu1 %v1252_v45  ;;  %v986_v31 = vsel %vm928_vm3, %v5087_v14, 0.0 }
 0x3af   : > { %4189 = vpow2.f32 %v971_v51  ;;  %v1241_v25 = vmul.f32 1.442695, %v1226_v42 }
 0x3b0   : > { %v5089_v58 = vpop.eup %4181  ;;  %v952_v61 = vpop.xlane.xlu1 %951 }
 0x3b1   : > { %v960_v49 = vsub.f32 %v4918_v0, %v952_v61  ;;  %v1215_v11 = vpop.xlane.xlu0 %1214  ;;  %v1249_v34 = vsel %vm928_vm3, %v5089_v58, 0.0  ;;  %4191 = vpow2.f32 %v1241_v25 }
 0x3b2   : > { %987 = vadd.xlane.f32.xlu1 %v986_v31  ;;  %1250 = vadd.xlane.f32.xlu0 %v1249_v34  ;;  %v1225_v29 = vsub.f32 %v4922_v48, %v1215_v11 }
 0x3b3   : > { %v975_v27 = vmul.f32 1.442695, %v960_v49 }
 0x3b4   : > { %v5096_v24 = vpop.eup %4183  ;;  %v1239_v51 = vmul.f32 1.442695, %v1225_v29 }
 0x3b5   : > { %v5099_v26 = vpop.xlane.xlu1 %1771  ;;  %v949_v30 = vpop.xlane.xlu0 %948  ;;  %v983_v0 = vsel %vm928_vm3, %v5096_v24, 0.0  ;;  %4193 = vpow2.f32 %v975_v27 }
 0x3b6   : > { %v5103_v4 = vpop.eup %4185  ;;  %984 = vadd.xlane.f32.xlu1 %v983_v0  ;;  %v959_v54 = vsub.f32 %v4934_v62, %v949_v30  ;;  %4195 = vpow2.f32 %v1239_v51 }
 0x3b7   : > { %v1258_v48 = vsel %vm928_vm3, %v5103_v4, 0.0 }
 0x3b8   : > { %v5105_v17 = vpop.eup %4187  ;;  %v973_v61 = vmul.f32 1.442695, %v959_v54 }
 0x3b9   : > { %v5108_v40 = vpop.xlane.xlu1 %1777  ;;  %v1769_v42 = vpop.xlane.xlu0 %1768  ;;  %v1255_v45 = vsel %vm928_vm3, %v5105_v17, 0.0 }
 0x3ba   : > { %v5114_v25 = vpop.eup %4189  ;;  %1259 = vadd.xlane.f32.xlu1 %v1258_v48  ;;  %1256 = vadd.xlane.f32.xlu0 %v1255_v45  ;;  %v1791_v49 = vsub.f32 %v4946_v15, %v1769_v42  ;;  %4197 = vpow2.f32 %v973_v61 }
 0x3bb   : > { %v992_v62 = vsel %vm928_vm3, %v5114_v25, 0.0  ;;  %v5119_v31 = vpop.eup %4191 }
 0x3bc   : > { %v1799_v27 = vmul.f32 1.442695, %v1791_v49  ;;  %v1264_v0 = vsel %vm928_vm3, %v5119_v31, 0.0 }
 0x3bd   : > { %v1775_v11 = vpop.xlane.xlu0 %1774  ;;  %v5121_v34 = vpop.xlane.xlu1 %1783 }
 0x3be   : > { %993 = vadd.xlane.f32.xlu1 %v992_v62  ;;  %v1793_v29 = vsub.f32 %v4960_v13, %v1775_v11  ;;  %4199 = vpow2.f32 %v1799_v27 }
 0x3bf   : > { %v5126_v51 = vpop.eup %4193 }
 0x3c0   : > { %v1803_v15 = vmul.f32 1.442695, %v1793_v29  ;;  %v998_v48 = vsel %vm928_vm3, %v5126_v51, 0.0  ;;  %v5131_v45 = vpop.eup %4195 }
 0x3c1   : > { %v1781_v30 = vpop.xlane.xlu0 %1780  ;;  %v1790_v42 = vpop.xlane.xlu1 %1789  ;;  %v1261_v11 = vsel %vm928_vm3, %v5131_v45, 0.0 }
 0x3c2   : > { %1265 = vadd.xlane.f32.xlu1 %v1264_v0  ;;  %v1795_v54 = vsub.f32 %v4974_v44, %v1781_v30  ;;  %4201 = vpow2.f32 %v1803_v15  ;;  %v1798_v13 = vsub.f32 %v4983_v52, %v1790_v42 }
 0x3c4   : > { %v1807_v61 = vmul.f32 1.442695, %v1795_v54  ;;  %v5136_v62 = vpop.eup %4197  ;;  %v1813_v27 = vmul.f32 1.442695, %v1798_v13 }
 0x3c5   : > { %v1787_v49 = vpop.xlane.xlu0 %1786  ;;  %v995_v29 = vsel %vm928_vm3, %v5136_v62, 0.0 }
 0x3c6   : > { %999 = vadd.xlane.f32.xlu1 %v998_v48  ;;  %4203 = vpow2.f32 %v1807_v61  ;;  %v1797_v44 = vsub.f32 %v4985_v56, %v1787_v49 }
 0x3c7   : > { %4205 = vpow2.f32 %v1813_v27 }
 0x3c8   : > { %v5141_v30 = vpop.eup %4199  ;;  %v1811_v52 = vmul.f32 1.442695, %v1797_v44 }
 0x3c9   : > { %v1815_v0 = vsel %vm928_vm3, %v5141_v30, 0.0 }
 0x3ca   : > { %1262 = vadd.xlane.f32.xlu1 %v1261_v11  ;;  %4207 = vpow2.f32 %v1811_v52 }
 0x3cc   : > { %v5149_v15 = vpop.eup %4201 }
 0x3cd   : > { %v1821_v54 = vsel %vm928_vm3, %v5149_v15, 0.0 }
 0x3ce   : > { %996 = vadd.xlane.f32.xlu1 %v995_v29 }
 0x3d0   : > { %4134 = vrot.lane.b32.xlu0 %v4133_v38, %s4363_s24  ;;  %v5153_v42 = vpop.eup %4203  ;;  %v957_v38 = vsub.f32 %v4908_v33, %v5083_v18  ;;  %v1792_v33 = vsub.f32 %v4941_v9, %v5099_v26 }
 0x3d1   : > { %v1827_v11 = vsel %vm928_vm3, %v5153_v42, 0.0  ;;  %v5161_v27 = vpop.eup %4205 }
 0x3d2   : > { %1816 = vadd.xlane.f32.xlu1 %v1815_v0  ;;  %v969_v52 = vmul.f32 1.442695, %v957_v38  ;;  %v1836_v0 = vsel %vm928_vm3, %v5161_v27, 0.0 }
 0x3d5   : > { %v2175_v56 = vpop.xlane.xlu1 %2174 }
 0x3d6   : > { %v2195_v48 = vsub.f32 %v4999_v19, %v2175_v56  ;;  %v2172_v13 = vpop.xlane.xlu0 %2171  ;;  %1822 = vadd.xlane.f32.xlu1 %v1821_v54  ;;  %v5169_v56 = vpop.eup %4207 }
 0x3d7   : > { %v2194_v1 = vsub.f32 %v5001_v20, %v2172_v13  ;;  %v1833_v9 = vsel %vm928_vm3, %v5169_v56, 0.0 }
 0x3d8   : > { %v2204_v36 = vmul.f32 1.442695, %v2195_v48  ;;  %v1801_v48 = vmul.f32 1.442695, %v1792_v33 }
 0x3d9   : > { %v2202_v61 = vmul.f32 1.442695, %v2194_v1  ;;  %v2181_v49 = vpop.xlane.xlu1 %2180 }
 0x3da   : > { %4209 = vpow2.f32 %v2204_v36  ;;  %v2197_v44 = vsub.f32 %v5013_v28, %v2181_v49  ;;  %v2178_v29 = vpop.xlane.xlu0 %2177  ;;  %1828 = vadd.xlane.f32.xlu1 %v1827_v11 }
 0x3db   : > { %4211 = vpow2.f32 %v2202_v61  ;;  %v2196_v20 = vsub.f32 %v5015_v32, %v2178_v29  ;;  %v1794_v32 = vsub.f32 %v4955_v21, %v5108_v40 }
 0x3dc   : > { %v2208_v19 = vmul.f32 1.442695, %v2197_v44 }
 0x3dd   : > { %v2187_v18 = vpop.xlane.xlu1 %2186  ;;  %v2206_v54 = vmul.f32 1.442695, %v2196_v20  ;;  %v1805_v38 = vmul.f32 1.442695, %v1794_v32 }
 0x3de   : > { %1837 = vadd.xlane.f32.xlu1 %v1836_v0  ;;  %4213 = vpow2.f32 %v2208_v19  ;;  %v2199_v28 = vsub.f32 %v5027_v10, %v2187_v18  ;;  %v2184_v13 = vpop.xlane.xlu0 %2183  ;;  %v1796_v10 = vsub.f32 %v4969_v3, %v5121_v34 }
 0x3df   : > { %4215 = vpow2.f32 %v969_v52  ;;  %v2198_v36 = vsub.f32 %v5029_v7, %v2184_v13 }
 0x3e0   : > { %4217 = vpow2.f32 %v2206_v54  ;;  %v2212_v1 = vmul.f32 1.442695, %v2199_v28  ;;  %v1809_v44 = vmul.f32 1.442695, %v1796_v10 }
 0x3e1   : > { %4219 = vpow2.f32 %v1801_v48  ;;  %v2193_v61 = vpop.xlane.xlu1 %2192  ;;  %v2210_v49 = vmul.f32 1.442695, %v2198_v36 }
 0x3e2   : > { %1834 = vadd.xlane.f32.xlu1 %v1833_v9  ;;  %4221 = vpow2.f32 %v2212_v1  ;;  %v2201_v11 = vsub.f32 %v5041_v43, %v2193_v61  ;;  %v2190_v29 = vpop.xlane.xlu0 %2189 }
 0x3e3   : > { %4223 = vpow2.f32 %v1805_v38  ;;  %v2200_v20 = vsub.f32 %v5043_v2, %v2190_v29 }
 0x3e4   : > { %v5176_v26 = vpop.eup %4209  ;;  %4225 = vpow2.f32 %v2210_v49  ;;  %v2216_v34 = vmul.f32 1.442695, %v2201_v11  ;;  %v5677_v11 = vpack.i.bf16 %v4620_v47, %v4612_v41 }
 0x3e5   : > { %v2221_v21 = vsel %vm928_vm3, %v5176_v26, 0.0  ;;  %v5183_v40 = vpop.eup %4211  ;;  %4227 = vpow2.f32 %v1809_v44  ;;  %v2214_v0 = vmul.f32 1.442695, %v2200_v20  ;;  %v5678_v44 = vpack.i.bf16 %v4664_v6, %v4656_v63 }
 0x3e6   : > { %2222 = vadd.xlane.f32.xlu1 %v2221_v21  ;;  %v2218_v7 = vsel %vm928_vm3, %v5183_v40, 0.0  ;;  %4229 = vpow2.f32 %v2216_v34 }
 0x3e7   : > { %4231 = vpow2.f32 %v2214_v0 }
 0x3e8   : > { %v5188_v19 = vpop.eup %4213 }
 0x3e9   : > { %v5190_v3 = vpop.eup %4215  ;;  %v2227_v52 = vsel %vm928_vm3, %v5188_v19, 0.0 }
 0x3ea   : > { %2219 = vadd.xlane.f32.xlu1 %v2218_v7  ;;  %v5195_v43 = vpop.eup %4217  ;;  %v989_v33 = vsel %vm928_vm3, %v5190_v3, 0.0 }
 0x3eb   : > { %v5199_v18 = vpop.eup %4219  ;;  %v2224_v54 = vsel %vm928_vm3, %v5195_v43, 0.0 }
 0x3ec   : > { %v5203_v28 = vpop.eup %4221  ;;  %v1818_v2 = vsel %vm928_vm3, %v5199_v18, 0.0 }
 0x3ed   : > { %v5207_v48 = vpop.eup %4223  ;;  %v2233_v32 = vsel %vm928_vm3, %v5203_v28, 0.0 }
 0x3ee   : > { %2228 = vadd.xlane.f32.xlu1 %v2227_v52  ;;  %v5211_v13 = vpop.eup %4225  ;;  %v1824_v9 = vsel %vm928_vm3, %v5207_v48, 0.0 }
 0x3ef   : > { %990 = vadd.xlane.f32.xlu0 %v989_v33  ;;  %v5215_v1 = vpop.eup %4227  ;;  %v2230_v36 = vsel %vm928_vm3, %v5211_v13, 0.0 }
 0x3f0   : > { %v5219_v38 = vpop.eup %4229  ;;  %v1830_v10 = vsel %vm928_vm3, %v5215_v1, 0.0 }
 0x3f1   : > { %v2239_v61 = vsel %vm928_vm3, %v5219_v38, 0.0  ;;  %v5225_v21 = vpop.eup %4231 }
 0x3f2   : > { %2225 = vadd.xlane.f32.xlu1 %v2224_v54  ;;  %v2236_v49 = vsel %vm928_vm3, %v5225_v21, 0.0  ;;  %v4122_v54 = vunpack.i.h.bf16 %v4815_v23 }
 0x3f3   : > { %1819 = vadd.xlane.f32.xlu0 %v1818_v2  ;;  %v4121_v2 = vunpack.i.l.bf16 %v4815_v23 }
 0x3f6   : > { %2234 = vadd.xlane.f32.xlu1 %v2233_v32  ;;  %v4132_v32 = vunpack.i.h.bf16 %v5051_v37 }
 0x3f7   : > { %1825 = vadd.xlane.f32.xlu0 %v1824_v9 }
 0x3fa   : > { %2231 = vadd.xlane.f32.xlu1 %v2230_v36 }
 0x3fb   : > { %1831 = vadd.xlane.f32.xlu0 %v1830_v10 }
 0x3fe   : > { %2240 = vadd.xlane.f32.xlu1 %v2239_v61 }
 0x402   : > { %2237 = vadd.xlane.f32.xlu1 %v2236_v49 }
 0x411   : > { %4144 = vrot.lane.b32.xlu0 %v4143_v59, %s4363_s24  ;;  %v4116_v59 = vunpack.i.l.bf16 %v5049_v35 }
 0x413   : > { %4139 = vrot.lane.b32.xlu1 %v5677_v11, %s4363_s24  ;;  %v3839_v6 = vpack.c.bf16 %v4117_v57, %v4116_v59 }
 0x415   : > { %4149 = vrot.lane.b32.xlu0 %v5678_v44, %s4363_s24 }
 0x432   : > { %v1248_v29 = vpop.xlane.xlu1 %1247 }
 0x433   : > { %4233 = vrcp.f32 %v1248_v29  ;;  %v1245_v7 = vpop.xlane.xlu0 %1244 }
 0x434   : > { %4235 = vrcp.f32 %v1245_v7 }
 0x436   : > { %v982_v34 = vpop.xlane.xlu1 %981 }
 0x437   : > { %v979_v20 = vpop.xlane.xlu0 %978 }
 0x43b   : > { %v1254_v52 = vpop.xlane.xlu1 %1253 }
 0x43c   : > { %4237 = vrcp.f32 %v1254_v52 }
 0x43d   : > { %v4234_v33 = vpop.eup %4233 }
 0x43e   : > { %v4236_v53 = vpop.eup %4235  ;;  %v1276_v63 = vmul.f32 %v4234_v33, %v5060_v5  ;;  %v3843_v5 = vpack.c.bf16 %v4122_v54, %v4121_v2 }
 0x43f   : > { %v988_v41 = vpop.xlane.xlu1 %987  ;;  %v1251_v47 = vpop.xlane.xlu0 %1250  ;;  %v1275_v0 = vmul.f32 %v4236_v53, %v5062_v12  ;;  %v4131_v12 = vunpack.i.l.bf16 %v5051_v37 }
 0x440   : > { %4239 = vrcp.f32 %v1251_v47 }
 0x441   : > { %3547 = vmatprep.mubr.msk.f32.mxu1 %vm928_vm3, %v1275_v0  ;;  %v3847_v61 = vpack.c.bf16 %v4132_v32, %v4131_v12 }
 0x442   : > { %3548 = vmatmul.mubr.msk.f32.vlgmr.msra.gmra.mrb[24].mxu1 %vm928_vm3, %v1276_v63 }
 0x443   : > { %3838 = vmatpush3.bf16.msra.mxu1 %v4821_v55  ;;  %v985_v35 = vpop.xlane.xlu1 %984 }
 0x444   : > { %3840 = vmatprep.subr.bf16.mxu1 %v3839_v6 }
 0x446   : > { %v4238_v10 = vpop.eup %4237 }
 0x447   : > { %3842 = vmatpush3.bf16.msra.mxu1 %v3839_v6  ;;  %v1260_v9 = vpop.xlane.xlu1 %1259  ;;  %v1257_v36 = vpop.xlane.xlu0 %1256  ;;  %v1278_v11 = vmul.f32 %v4238_v10, %v5080_v46 }
 0x448   : > { %4241 = vrcp.f32 %v1260_v9  ;;  %3844 = vmatprep.subr.bf16.mxu1 %v3843_v5 }
 0x449   : > { %4243 = vrcp.f32 %v1257_v36 }
 0x44a   : > { %v4240_v23 = vpop.eup %4239  ;;  %4245 = vrcp.f32 %v979_v20 }
 0x44b   : > { %3846 = vmatpush3.bf16.msra.mxu1 %v3843_v5  ;;  %v994_v49 = vpop.xlane.xlu1 %993  ;;  %v1277_v55 = vmul.f32 %v4240_v23, %v5089_v58 }
 0x44c   : > { %3848 = vmatprep.subr.bf16.mxu1 %v3847_v61 }
 0x44d   : > { %3550 = vmatprep.mubr.msk.f32.mxu1 %vm928_vm3, %v1277_v55 }
 0x44e   : > { %3551 = vmatmul.mubr.msk.f32.gmra.mrb[26].mxu1 %vm928_vm3, %v1278_v11 }
 0x44f   : > { %v1266_v37 = vpop.xlane.xlu1 %1265  ;;  %3850 = vmatpush3.bf16.msra.mxu1 %v3847_v61 }
 0x450   : > { %3876 = vmatprep.subr.bf16.mxu1 %v4608_v39  ;;  %4247 = vrcp.f32 %v1266_v37 }
 0x452   : > { %v4242_v44 = vpop.eup %4241 }
 0x453   : > { %v4244_v29 = vpop.eup %4243  ;;  %v1000_v7 = vpop.xlane.xlu1 %999  ;;  %v1280_v52 = vmul.f32 %v4242_v44, %v5103_v4 }
 0x454   : > { %v1279_v33 = vmul.f32 %v4244_v29, %v5105_v17  ;;  %v4246_v57 = vpop.eup %4245 }
 0x455   : > { %v1009_v63 = vmul.f32 %v4246_v57, %v5072_v22 }
 0x456   : > { %3553 = vmatprep.mubr.msk.f32.mxu1 %vm928_vm3, %v1279_v33 }
 0x457   : > { %3554 = vmatmul.mubr.msk.f32.gmra.mrb[28].mxu1 %vm928_vm3, %v1280_v52  ;;  %v1263_v46 = vpop.xlane.xlu1 %1262 }
 0x458   : > { %4249 = vrcp.f32 %v1263_v46 }
 0x459   : > { %4251 = vrcp.f32 %v982_v34 }
 0x45a   : > { %4253 = vrcp.f32 %v985_v35  ;;  %v4248_v59 = vpop.eup %4247 }
 0x45b   : > { %v997_v58 = vpop.xlane.xlu1 %996  ;;  %4255 = vrcp.f32 %v988_v41  ;;  %v1282_v17 = vmul.f32 %v4248_v59, %v5119_v31 }
 0x45c   : > { %4257 = vrcp.f32 %v994_v49 }
 0x45d   : > { %4259 = vrcp.f32 %v997_v58 }
 0x45f   : > { %v1817_v53 = vpop.xlane.xlu1 %1816 }
 0x462   : > { %v4250_v47 = vpop.eup %4249 }
 0x463   : > { %v1823_v0 = vpop.xlane.xlu1 %1822  ;;  %v1281_v4 = vmul.f32 %v4250_v47, %v5131_v45  ;;  %v4252_v20 = vpop.eup %4251 }
 0x464   : > { %v4254_v6 = vpop.eup %4253  ;;  %v1010_v41 = vmul.f32 %v4252_v20, %v5070_v16  ;;  %v4135_v45 = vpop.permute.xlu0 %4134 }
 0x465   : > { %3556 = vmatprep.mubr.msk.f32.mxu1 %vm928_vm3, %v1281_v4  ;;  %v4256_v54 = vpop.eup %4255  ;;  %v1011_v2 = vmul.f32 %v4254_v6, %v5096_v24  ;;  %v4137_v24 = vunpack.i.h.bf16 %v4135_v45  ;;  %v4136_v35 = vunpack.i.l.bf16 %v4135_v45 }
 0x466   : > { %3557 = vmatmul.mubr.msk.f32.gmra.mrb[30].mxu1 %vm928_vm3, %v1282_v17  ;;  %v1012_v22 = vmul.f32 %v4256_v54, %v5087_v14  ;;  %v4258_v10 = vpop.eup %4257 }
 0x467   : > { %v1829_v34 = vpop.xlane.xlu1 %1828  ;;  %3575 = vmatprep.mubr.msk.f32.mxu1 %vm928_vm3, %v1009_v63  ;;  %v3915_v32 = vpack.c.bf16 %v4137_v24, %v4136_v35  ;;  %v4260_v61 = vpop.eup %4259  ;;  %v1014_v11 = vmul.f32 %v4258_v10, %v5114_v25 }
 0x468   : > { %v1015_v44 = vmul.f32 %v4260_v61, %v5136_v62 }
 0x46a   : > { %3576 = vmatmul.mubr.msk.f32.vlgmr.msra.gmra.mrb[24].mxu1 %vm928_vm3, %v1010_v41 }
 0x46b   : > { %3878 = vmatpush3.bf16.msra.mxu1 %v4608_v39  ;;  %v1838_v31 = vpop.xlane.xlu1 %1837  ;;  %3578 = vmatprep.mubr.msk.f32.mxu1 %vm928_vm3, %v1011_v2 }
 0x46c   : > { %3880 = vmatprep.subr.bf16.mxu1 %v4630_v50 }
 0x46e   : > { %3579 = vmatmul.mubr.msk.f32.gmra.mrb[26].mxu1 %vm928_vm3, %v1012_v22 }
 0x46f   : > { %3882 = vmatpush3.bf16.msra.mxu1 %v4630_v50  ;;  %v1835_v16 = vpop.xlane.xlu1 %1834 }
 0x470   : > { %3884 = vmatprep.subr.bf16.mxu1 %v4652_v60 }
 0x473   : > { %3886 = vmatpush3.bf16.msra.mxu1 %v4652_v60  ;;  %v2223_v39 = vpop.xlane.xlu1 %2222 }
 0x474   : > { %3888 = vmatprep.subr.bf16.mxu1 %v4672_v8 }
 0x477   : > { %3890 = vmatpush3.bf16.msra.mxu1 %v4672_v8  ;;  %v2220_v12 = vpop.xlane.xlu1 %2219 }
 0x478   : > { %3916 = vmatprep.subr.bf16.mxu1 %v3915_v32 }
 0x47b   : > { %v5280_v14 = vpop.xlane.xlu1 %2228 }
 0x47c   : > { %v991_v50 = vpop.xlane.xlu0 %990 }
 0x47d   : > { %4261 = vrcp.f32 %v991_v50 }
 0x47e   : > { %4263 = vrcp.f32 %v1000_v7 }
 0x47f   : > { %v2226_v5 = vpop.xlane.xlu1 %2225  ;;  %4265 = vrcp.f32 %v1817_v53 }
 0x480   : > { %v1820_v9 = vpop.xlane.xlu0 %1819 }
 0x481   : > { %4267 = vrcp.f32 %v1820_v9  ;;  %v4345_v9 = vld [vmem:[%s4457_s30 + $0x8] sm:$0xff] }
 0x482   : > { %4269 = vrcp.f32 %v1823_v0 }
 0x483   : > { %v5282_v36 = vpop.xlane.xlu1 %2234 }
 0x484   : > { %v1826_v60 = vpop.xlane.xlu0 %1825 }
 0x485   : > { %4271 = vrcp.f32 %v1826_v60  ;;  %v4346_v60 = vld [vmem:[%s4457_s30] sm:$0xff] }
 0x486   : > { %4273 = vrcp.f32 %v1829_v34 }
 0x487   : > { %v4262_v8 = vpop.eup %4261  ;;  %v2232_v23 = vpop.xlane.xlu1 %2231 }
 0x488   : > { %v1013_v49 = vmul.f32 %v4262_v8, %v5190_v3  ;;  %v1832_v55 = vpop.xlane.xlu0 %1831  ;;  %v4264_v37 = vpop.eup %4263 }
 0x489   : > { %v4266_v29 = vpop.eup %4265  ;;  %4275 = vrcp.f32 %v1832_v55  ;;  %v1016_v52 = vmul.f32 %v4264_v37, %v5126_v51 }
 0x48a   : > { %3581 = vmatprep.mubr.msk.f32.mxu1 %vm928_vm3, %v1013_v49  ;;  %4277 = vrcp.f32 %v1835_v16  ;;  %v1847_v33 = vmul.f32 %v4266_v29, %v5141_v30 }
 0x48b   : > { %v2241_v7 = vpop.xlane.xlu1 %2240  ;;  %3582 = vmatmul.mubr.msk.f32.gmra.mrb[28].mxu1 %vm928_vm3, %v1014_v11  ;;  %v4268_v3 = vpop.eup %4267  ;;  %4279 = vrcp.f32 %v1838_v31  ;;  %v4348_v11 = vld [vmem:[%s4457_s30 + $0x10] sm:$0xff] }
 0x48c   : > { %3584 = vmatprep.mubr.msk.f32.mxu1 %vm928_vm3, %v1015_v44  ;;  %v4270_v46 = vpop.eup %4269  ;;  %v4145_v25 = vpop.permute.xlu0 %4144  ;;  %4281 = vrcp.f32 %v2220_v12  ;;  %v1848_v62 = vmul.f32 %v4268_v3, %v5199_v18 }
 0x48d   : > { %v1849_v57 = vmul.f32 %v4270_v46, %v5149_v15  ;;  %v4147_v51 = vunpack.i.h.bf16 %v4145_v25  ;;  %v4146_v30 = vunpack.i.l.bf16 %v4145_v25  ;;  %4283 = vrcp.f32 %v2223_v39 }
 0x48e   : > { %4285 = vrcp.f32 %v2226_v5  ;;  %v3294_v5 = vld [vmem:[%s5666_s5] ss:$0 sm:$0xff] }
 0x48f   : > { %v2238_v58 = vpop.xlane.xlu1 %2237  ;;  %3585 = vmatmul.mubr.msk.f32.gmra.mrb[30].mxu1 %vm928_vm3, %v1016_v52  ;;  %v4272_v53 = vpop.eup %4271  ;;  %v3923_v34 = vpack.c.bf16 %v4147_v51, %v4146_v30  ;;  %4287 = vrcp.f32 %v5280_v14  ;;  %v4350_v30 = vld [vmem:[%s4457_s30 + $0x28] sm:$0xff] }
 0x490   : > { %3631 = vmatprep.mubr.msk.f32.mxu1 %vm928_vm3, %v1847_v33  ;;  %v4274_v59 = vpop.eup %4273  ;;  %v4150_v17 = vpop.permute.xlu0 %4149  ;;  %v1850_v20 = vmul.f32 %v4272_v53, %v5207_v48  ;;  %4289 = vrcp.f32 %v2232_v23  ;;  %v4347_v23 = vld [vmem:[%s4457_s30 + $0x18] sm:$0xff]  ;;  %v4349_v53 = vld [vmem:[%s4457_s30 + $0x20] sm:$0xff] }
 0x491   : > { %v1851_v15 = vmul.f32 %v4274_v59, %v5153_v42  ;;  %v4152_v41 = vunpack.i.h.bf16 %v4150_v17  ;;  %v4151_v54 = vunpack.i.l.bf16 %v4150_v17  ;;  %4291 = vrcp.f32 %v5282_v36 }
 0x492   : > { %4293 = vrcp.f32 %v2238_v58 }
 0x493   : > { %v4140_v47 = vpop.permute.xlu1 %4139  ;;  %3632 = vmatmul.mubr.msk.f32.vlgmr.msra.gmra.mrb[24].mxu1 %vm928_vm3, %v1848_v62  ;;  %v4276_v63 = vpop.eup %4275  ;;  %v3927_v22 = vpack.c.bf16 %v4152_v41, %v4151_v54  ;;  %4295 = vrcp.f32 %v2241_v7 }
 0x494   : > { %v4142_v0 = vunpack.i.h.bf16 %v4140_v47  ;;  %v4141_v4 = vunpack.i.l.bf16 %v4140_v47  ;;  %3918 = vmatpush3.bf16.msra.mxu1 %v3915_v32  ;;  %3634 = vmatprep.mubr.msk.f32.mxu1 %vm928_vm3, %v1849_v57  ;;  %v4278_v6 = vpop.eup %4277  ;;  %v1852_v2 = vmul.f32 %v4276_v63, %v5215_v1 }
 0x495   : > { %v4280_v48 = vpop.eup %4279  ;;  %v1853_v31 = vmul.f32 %v4278_v6, %v5169_v56  ;;  %v4351_v6 = vld [vmem:[%s4457_s30 + $0x30] sm:$0xff] }
 0x496   : > { %v3919_v18 = vpack.c.bf16 %v4142_v0, %v4141_v4  ;;  %v4282_v42 = vpop.eup %4281  ;;  %v1854_v45 = vmul.f32 %v4280_v48, %v5161_v27 }
 0x497   : > { %3635 = vmatmul.mubr.msk.f32.gmra.mrb[26].mxu1 %vm928_vm3, %v1850_v20  ;;  %v2250_v1 = vmul.f32 %v4282_v42, %v5183_v40  ;;  %v4284_v16 = vpop.eup %4283 }
 0x498   : > { %3637 = vmatprep.mubr.msk.f32.mxu1 %vm928_vm3, %v1851_v15  ;;  %3920 = vmatprep.subr.bf16.mxu1 %v3919_v18  ;;  %v4286_v24 = vpop.eup %4285  ;;  %v2251_v56 = vmul.f32 %v4284_v16, %v5176_v26 }
 0x499   : > { %3922 = vmatpush3.bf16.msra.mxu1 %v3919_v18  ;;  %v4288_v35 = vpop.eup %4287  ;;  %v2252_v39 = vmul.f32 %v4286_v24, %v5195_v43 }
 0x49a   : > { %3924 = vmatprep.subr.bf16.mxu1 %v3923_v34  ;;  %v4290_v32 = vpop.eup %4289  ;;  %v2253_v27 = vmul.f32 %v4288_v35, %v5188_v19 }
 0x49b   : > { %3638 = vmatmul.mubr.msk.f32.gmra.mrb[28].mxu1 %vm928_vm3, %v1852_v2  ;;  %v4292_v40 = vpop.eup %4291  ;;  %v2254_v12 = vmul.f32 %v4290_v32, %v5211_v13  ;;  %v4352_v2 = vld [vmem:[%s4457_s30 + $0x38] sm:$0xff] }
 0x49c   : > { %3640 = vmatprep.mubr.msk.f32.mxu1 %vm928_vm3, %v1853_v31  ;;  %v4294_v14 = vpop.eup %4293  ;;  %v2255_v26 = vmul.f32 %v4292_v40, %v5203_v28  ;;  %v2600_v40 = vld [vmem:[%s5670_s9] sm:$0xff] }
 0x49d   : > { %3926 = vmatpush3.bf16.msra.mxu1 %v3923_v34  ;;  %v4296_v43 = vpop.eup %4295  ;;  %v2256_v50 = vmul.f32 %v4294_v14, %v5225_v21 }
 0x49e   : > { %3928 = vmatprep.subr.bf16.mxu1 %v3927_v22  ;;  %v2257_v19 = vmul.f32 %v4296_v43, %v5219_v38  ;;  %v2603_v43 = vld [vmem:[%s5670_s9 + $0x18] sm:$0xff] }
 0x49f   : > { %3641 = vmatmul.mubr.msk.f32.gmra.mrb[30].mxu1 %vm928_vm3, %v1854_v45 }
 0x4a0   : > { %3687 = vmatprep.mubr.msk.f32.mxu1 %vm928_vm3, %v2250_v1 }
 0x4a1   : > { %3930 = vmatpush3.bf16.msra.mxu1 %v3927_v22 }
 0x4a4   : > { %3688 = vmatmul.mubr.msk.f32.vlgmr.msra.gmra.mrb[24].mxu1 %vm928_vm3, %v2251_v56 }
 0x4a5   : > { %3690 = vmatprep.mubr.msk.f32.mxu1 %vm928_vm3, %v2252_v39 }
 0x4a8   : > { %3691 = vmatmul.mubr.msk.f32.gmra.mrb[26].mxu1 %vm928_vm3, %v2253_v27 }
 0x4a9   : > { %3693 = vmatprep.mubr.msk.f32.mxu1 %vm928_vm3, %v2254_v12  ;;  %v2601_v12 = vld [vmem:[%s5670_s9 + $0x8] sm:$0xff] }
 0x4aa   : > { %v3931_v14 = vpack.c.bf16 %v2601_v12, %v2600_v40 }
 0x4ac   : > { %3694 = vmatmul.mubr.msk.f32.gmra.mrb[28].mxu1 %vm928_vm3, %v2255_v26  ;;  %3932 = vmatprep.subr.bf16.mxu1 %v3931_v14  ;;  %v2602_v26 = vld [vmem:[%s5670_s9 + $0x10] sm:$0xff] }
 0x4ad   : > { %3696 = vmatprep.mubr.msk.f32.mxu1 %vm928_vm3, %v2256_v50  ;;  %3934 = vmatpush3.bf16.msra.mxu1 %v3931_v14  ;;  %v3935_v50 = vpack.c.bf16 %v2603_v43, %v2602_v26 }
 0x4af   : > { %3936 = vmatprep.subr.bf16.mxu1 %v3935_v50 }
 0x4b0   : > { %3697 = vmatmul.mubr.msk.f32.gmra.mrb[30].mxu1 %vm928_vm3, %v2257_v19 }
 0x4b1   : > { %3938 = vmatpush3.bf16.msra.mxu1 %v3935_v50 }
 0x577   : > { %v3689_v13 = vpop.f32.mrb[24].mxu1 }
 0x578   : > { %v2428_v28 = vadd.f32 %v4345_v9, %v3689_v13  ;;  %v2380_v36 = vpop.f32.mrb[25].mxu1 }
 0x579   : > { %v2427_v10 = vadd.f32 %v4346_v60, %v2380_v36 }
 0x57a   : > { %v5331_v21 = vadd.f32 %v3294_v5, %v2428_v28 }
 0x57b   : > { %v5333_v61 = vadd.f32 %v3294_v5, %v2427_v10  ;;  %v3692_v8 = vpop.f32.mrb[26].mxu1 }
 0x57c   : > { %v2430_v38 = vadd.f32 %v4347_v23, %v3692_v8  ;;  %v2390_v49 = vpop.f32.mrb[27].mxu1  ;;  %v2453_v55 = vsel %vm449_vm0, %v5331_v21, 0.0  ;;  %v2483_v7 = vmul.f32 %v5331_v21, %v5331_v21 }
 0x57d   : > { %v2429_v37 = vadd.f32 %v4348_v11, %v2390_v49  ;;  %2454 = vadd.xlane.f32.xlu0 %v2453_v55  ;;  %v2450_v44 = vsel %vm449_vm0, %v5333_v61, 0.0  ;;  %v2482_v29 = vmul.f32 %v5333_v61, %v5333_v61 }
 0x57e   : > { %2451 = vadd.xlane.f32.xlu1 %v2450_v44  ;;  %v5348_v25 = vadd.f32 %v3294_v5, %v2430_v38  ;;  %v2493_v58 = vsel %vm449_vm0, %v2483_v7, 0.0 }
 0x57f   : > { %v3695_v52 = vpop.f32.mrb[28].mxu1  ;;  %v2490_v3 = vsel %vm449_vm0, %v2482_v29, 0.0  ;;  %v5346_v33 = vadd.f32 %v3294_v5, %v2429_v37 }
 0x580   : > { %v2400_v46 = vpop.f32.mrb[29].mxu1  ;;  %v2432_v0 = vadd.f32 %v4350_v30, %v3695_v52  ;;  %v2459_v4 = vsel %vm449_vm0, %v5348_v25, 0.0  ;;  %v2485_v17 = vmul.f32 %v5348_v25, %v5348_v25 }
 0x581   : > { %2491 = vadd.xlane.f32.xlu0 %v2490_v3  ;;  %v2431_v57 = vadd.f32 %v4349_v53, %v2400_v46  ;;  %v2456_v47 = vsel %vm449_vm0, %v5346_v33, 0.0  ;;  %v2484_v51 = vmul.f32 %v5346_v33, %v5346_v33 }
 0x582   : > { %2494 = vadd.xlane.f32.xlu1 %v2493_v58  ;;  %v5364_v18 = vadd.f32 %v3294_v5, %v2432_v0  ;;  %v2499_v15 = vsel %vm449_vm0, %v2485_v17, 0.0 }
 0x583   : > { %v3698_v62 = vpop.f32.mrb[30].mxu1  ;;  %v5361_v20 = vadd.f32 %v3294_v5, %v2431_v57  ;;  %v2496_v63 = vsel %vm449_vm0, %v2484_v51, 0.0 }
 0x584   : > { %v2410_v59 = vpop.f32.mrb[31].mxu1  ;;  %v2434_v48 = vadd.f32 %v4352_v2, %v3698_v62  ;;  %v2465_v31 = vsel %vm449_vm0, %v5364_v18, 0.0  ;;  %v2487_v42 = vmul.f32 %v5364_v18, %v5364_v18 }
 0x585   : > { %2457 = vadd.xlane.f32.xlu0 %v2456_v47  ;;  %v2433_v34 = vadd.f32 %v4351_v6, %v2410_v59  ;;  %v2462_v41 = vsel %vm449_vm0, %v5361_v20, 0.0  ;;  %v2486_v54 = vmul.f32 %v5361_v20, %v5361_v20 }
 0x586   : > { %2460 = vadd.xlane.f32.xlu1 %v2459_v4  ;;  %v5380_v1 = vadd.f32 %v3294_v5, %v2434_v48  ;;  %v2505_v16 = vsel %vm449_vm0, %v2487_v42, 0.0 }
 0x587   : > { %v5377_v22 = vadd.f32 %v3294_v5, %v2433_v34  ;;  %v2502_v45 = vsel %vm449_vm0, %v2486_v54, 0.0 }
 0x588   : > { %v2471_v35 = vsel %vm449_vm0, %v5380_v1, 0.0  ;;  %v2489_v39 = vmul.f32 %v5380_v1, %v5380_v1 }
 0x589   : > { %2497 = vadd.xlane.f32.xlu0 %v2496_v63  ;;  %v2468_v24 = vsel %vm449_vm0, %v5377_v22, 0.0  ;;  %v2488_v56 = vmul.f32 %v5377_v22, %v5377_v22 }
 0x58a   : > { %2500 = vadd.xlane.f32.xlu1 %v2499_v15  ;;  %v2511_v27 = vsel %vm449_vm0, %v2489_v39, 0.0 }
 0x58b   : > { %v2508_v32 = vsel %vm449_vm0, %v2488_v56, 0.0 }
 0x58d   : > { %2463 = vadd.xlane.f32.xlu0 %v2462_v41  ;;  %v5418_v41 = vld [vmem:[%s5668_s7] ss:$0 sm:$0xff] }
 0x58e   : > { %2466 = vadd.xlane.f32.xlu1 %v2465_v31 }
 0x591   : > { %2503 = vadd.xlane.f32.xlu0 %v2502_v45 }
 0x592   : > { %2506 = vadd.xlane.f32.xlu1 %v2505_v16 }
 0x595   : > { %2469 = vadd.xlane.f32.xlu0 %v2468_v24 }
 0x596   : > { %2472 = vadd.xlane.f32.xlu1 %v2471_v35  ;;  %v3296_v35 = vld [vmem:[%s5669_s8] ss:$0 sm:$0xff] }
 0x599   : > { %2509 = vadd.xlane.f32.xlu0 %v2508_v32 }
 0x59a   : > { %2512 = vadd.xlane.f32.xlu1 %v2511_v27 }
 0x60a   : > { %v2455_v19 = vpop.xlane.xlu0 %2454 }
 0x60b   : > { %v2452_v13 = vpop.xlane.xlu1 %2451  ;;  %v2475_v5 = vmul.f32 0.03125, %v2455_v19 }
 0x60c   : > { %v2474_v9 = vmul.f32 0.03125, %v2452_v13 }
 0x60d   : > { %v2531_v8 = vmul.f32 %v2475_v5, %v2475_v5  ;;  %v2523_v34 = vsub.f32 %v5331_v21, %v2475_v5 }
 0x60e   : > { %v2530_v28 = vmul.f32 %v2474_v9, %v2474_v9  ;;  %v2492_v36 = vpop.xlane.xlu0 %2491  ;;  %v2522_v63 = vsub.f32 %v5333_v61, %v2474_v9 }
 0x60f   : > { %v2514_v60 = vmul.f32 0.03125, %v2492_v36  ;;  %v2495_v10 = vpop.xlane.xlu1 %2494 }
 0x610   : > { %v2515_v23 = vmul.f32 0.03125, %v2495_v10 }
 0x611   : > { %v2538_v38 = vsub.f32 %v2514_v60, %v2530_v28 }
 0x612   : > { %v2539_v49 = vsub.f32 %v2515_v23, %v2531_v8  ;;  %v2458_v55 = vpop.xlane.xlu0 %2457 }
 0x613   : > { %v2546_v11 = vadd.f32 1e-05, %v2538_v38  ;;  %v5405_v37 = vmul.f32 0.03125, %v2458_v55  ;;  %v2461_v44 = vpop.xlane.xlu1 %2460 }
 0x614   : > { %v2547_v29 = vadd.f32 1e-05, %v2539_v49  ;;  %v2477_v7 = vmul.f32 0.03125, %v2461_v44 }
 0x615   : > { %4297 = vrsqrt.f32 %v2546_v11  ;;  %v2532_v3 = vmul.f32 %v5405_v37, %v5405_v37  ;;  %v2524_v5 = vsub.f32 %v5346_v33, %v5405_v37 }
 0x616   : > { %4299 = vrsqrt.f32 %v2547_v29  ;;  %v2498_v52 = vpop.xlane.xlu0 %2497  ;;  %v2533_v62 = vmul.f32 %v2477_v7, %v2477_v7  ;;  %v2525_v36 = vsub.f32 %v5348_v25, %v2477_v7 }
 0x617   : > { %v2516_v46 = vmul.f32 0.03125, %v2498_v52  ;;  %v2501_v58 = vpop.xlane.xlu1 %2500 }
 0x618   : > { %v2517_v53 = vmul.f32 0.03125, %v2501_v58 }
 0x619   : > { %v2540_v57 = vsub.f32 %v2516_v46, %v2532_v3 }
 0x61a   : > { %v2541_v59 = vsub.f32 %v2517_v53, %v2533_v62  ;;  %v2464_v47 = vpop.xlane.xlu0 %2463 }
 0x61b   : > { %v2548_v51 = vadd.f32 1e-05, %v2540_v57  ;;  %v5409_v30 = vmul.f32 0.03125, %v2464_v47  ;;  %v2467_v0 = vpop.xlane.xlu1 %2466 }
 0x61c   : > { %v2549_v4 = vadd.f32 1e-05, %v2541_v59  ;;  %v5411_v17 = vmul.f32 0.03125, %v2467_v0 }
 0x61d   : > { %4301 = vrsqrt.f32 %v2548_v51  ;;  %v2534_v54 = vmul.f32 %v5409_v30, %v5409_v30  ;;  %v2526_v62 = vsub.f32 %v5361_v20, %v5409_v30 }
 0x61e   : > { %4303 = vrsqrt.f32 %v2549_v4  ;;  %v2504_v15 = vpop.xlane.xlu0 %2503  ;;  %v2535_v42 = vmul.f32 %v5411_v17, %v5411_v17  ;;  %v2527_v57 = vsub.f32 %v5364_v18, %v5411_v17 }
 0x61f   : > { %v4298_v6 = vpop.eup %4297  ;;  %v2518_v2 = vmul.f32 0.03125, %v2504_v15  ;;  %v2507_v48 = vpop.xlane.xlu1 %2506 }
 0x620   : > { %v4300_v31 = vpop.eup %4299  ;;  %v2519_v45 = vmul.f32 0.03125, %v2507_v48  ;;  %v2562_v16 = vmul.f32 %v4298_v6, %v2522_v63 }
 0x621   : > { %v2563_v24 = vmul.f32 %v4300_v31, %v2523_v34  ;;  %v2542_v56 = vsub.f32 %v2518_v2, %v2534_v54 }
 0x622   : > { %v2543_v39 = vsub.f32 %v2519_v45, %v2535_v42  ;;  %v2470_v32 = vpop.xlane.xlu0 %2469  ;;  %v2577_v27 = vmul.f32 %v5418_v41, %v2562_v16  ;;  %v2956_v16 = vld [vmem:[%s5672_s11] sm:$0xff] }
 0x623   : > { %v2578_v40 = vmul.f32 %v5418_v41, %v2563_v24  ;;  %v2550_v12 = vadd.f32 1e-05, %v2542_v56  ;;  %v2480_v14 = vmul.f32 0.03125, %v2470_v32  ;;  %v2473_v26 = vpop.xlane.xlu1 %2472  ;;  %v2957_v24 = vld [vmem:[%s5672_s11 + $0x8] sm:$0xff]  ;;  %v2960_v32 = vld [vmem:[%s5672_s11 + $0x20] sm:$0xff] }
 0x624   : > { %v2551_v43 = vadd.f32 1e-05, %v2543_v39  ;;  %v2481_v50 = vmul.f32 0.03125, %v2473_v26  ;;  %v2592_v19 = vadd.f32 %v3296_v35, %v2577_v27  ;;  %v3939_v56 = vpack.c.bf16 %v2957_v24, %v2956_v16  ;;  %v2961_v27 = vld [vmem:[%s5672_s11 + $0x28] sm:$0xff] }
 0x625   : > { %4305 = vrsqrt.f32 %v2550_v12  ;;  %v2593_v13 = vadd.f32 %v3296_v35, %v2578_v40  ;;  %v2536_v60 = vmul.f32 %v2480_v14, %v2480_v14  ;;  %v2528_v30 = vsub.f32 %v5377_v22, %v2480_v14  ;;  %v2962_v12 = vld [vmem:[%s5672_s11 + $0x30] sm:$0xff]  ;;  %v2963_v14 = vld [vmem:[%s5672_s11 + $0x38] sm:$0xff] }
 0x626   : > { %4307 = vrsqrt.f32 %v2551_v43  ;;  %3707 = vmatprep.mubr.msk.f32.mxu1 %vm449_vm0, %v2592_v19  ;;  %v2510_v9 = vpop.xlane.xlu0 %2509  ;;  %v2537_v38 = vmul.f32 %v2481_v50, %v2481_v50  ;;  %v2529_v34 = vsub.f32 %v5380_v1, %v2481_v50  ;;  %3940 = vmatprep.subr.bf16.mxu0 %v3939_v56  ;;  %v3947_v40 = vpack.c.bf16 %v2961_v27, %v2960_v32  ;;  %v2964_v43 = vld [vmem:[%s5672_s11 + $0x40] sm:$0xff]  ;;  %v2965_v50 = vld [vmem:[%s5672_s11 + $0x48] sm:$0xff] }
 0x627   : > { %v4302_v28 = vpop.eup %4301  ;;  %v2520_v10 = vmul.f32 0.03125, %v2510_v9  ;;  %3708 = vmatmul.mubr.msk.f32.vlgmr.msra.gmra.mrb[32].mxu1 %vm449_vm0, %v2593_v13  ;;  %v2513_v8 = vpop.xlane.xlu1 %2512  ;;  %3942 = vmatpush3.bf16.msra.mxu0 %v3939_v56  ;;  %v3951_v26 = vpack.c.bf16 %v2963_v14, %v2962_v12  ;;  %v3955_v19 = vpack.c.bf16 %v2965_v50, %v2964_v43  ;;  %v2966_v13 = vld [vmem:[%s5672_s11 + $0x50] sm:$0xff] }
 0x628   : > { %v4304_v23 = vpop.eup %4303  ;;  %v2521_v49 = vmul.f32 0.03125, %v2513_v8  ;;  %v2564_v55 = vmul.f32 %v4302_v28, %v2524_v5  ;;  %v2967_v5 = vld [vmem:[%s5672_s11 + $0x58] sm:$0xff]  ;;  %v2968_v28 = vld [vmem:[%s5672_s11 + $0x60] sm:$0xff] }
 0x629   : > { %v2544_v11 = vsub.f32 %v2520_v10, %v2536_v60  ;;  %v2565_v44 = vmul.f32 %v4304_v23, %v2525_v36  ;;  %v3959_v9 = vpack.c.bf16 %v2967_v5, %v2966_v13  ;;  %v2969_v36 = vld [vmem:[%s5672_s11 + $0x68] sm:$0xff]  ;;  %v2970_v10 = vld [vmem:[%s5672_s11 + $0x70] sm:$0xff]  ;;  %v2971_v8 = vld [vmem:[%s5672_s11 + $0x78] sm:$0xff] }
 0x62a   : > { %v2545_v29 = vsub.f32 %v2521_v49, %v2537_v38  ;;  %v2579_v37 = vmul.f32 %v5418_v41, %v2564_v55  ;;  %v3963_v60 = vpack.c.bf16 %v2969_v36, %v2968_v28  ;;  %v3967_v23 = vpack.c.bf16 %v2971_v8, %v2970_v10  ;;  %v3297_v38 = vld [vmem:[%s5671_s10] ss:$0 sm:$0xff] }
 0x62b   : > { %v2552_v52 = vadd.f32 1e-05, %v2544_v11  ;;  %v2580_v3 = vmul.f32 %v5418_v41, %v2565_v44 }
 0x62c   : > { %v2553_v46 = vadd.f32 1e-05, %v2545_v29  ;;  %v2594_v58 = vadd.f32 %v3296_v35, %v2579_v37 }
 0x62d   : > { %4309 = vrsqrt.f32 %v2552_v52  ;;  %v2595_v7 = vadd.f32 %v3296_v35, %v2580_v3 }
 0x62e   : > { %4311 = vrsqrt.f32 %v2553_v46  ;;  %3710 = vmatprep.mubr.msk.f32.mxu1 %vm449_vm0, %v2594_v58 }
 0x62f   : > { %v4306_v53 = vpop.eup %4305  ;;  %3711 = vmatmul.mubr.msk.f32.gmra.mrb[34].mxu1 %vm449_vm0, %v2595_v7 }
 0x630   : > { %v4308_v59 = vpop.eup %4307  ;;  %v2566_v47 = vmul.f32 %v4306_v53, %v2526_v62 }
 0x631   : > { %v2567_v51 = vmul.f32 %v4308_v59, %v2527_v57 }
 0x632   : > { %v2581_v0 = vmul.f32 %v5418_v41, %v2566_v47 }
 0x633   : > { %v2582_v4 = vmul.f32 %v5418_v41, %v2567_v51 }
 0x634   : > { %v2596_v63 = vadd.f32 %v3296_v35, %v2581_v0 }
 0x635   : > { %v2597_v15 = vadd.f32 %v3296_v35, %v2582_v4 }
 0x636   : > { %3713 = vmatprep.mubr.msk.f32.mxu1 %vm449_vm0, %v2596_v63 }
 0x637   : > { %v4310_v6 = vpop.eup %4309  ;;  %3714 = vmatmul.mubr.msk.f32.gmra.mrb[36].mxu1 %vm449_vm0, %v2597_v15 }
 0x638   : > { %v4312_v17 = vpop.eup %4311  ;;  %v2568_v54 = vmul.f32 %v4310_v6, %v2528_v30 }
 0x639   : > { %v2569_v2 = vmul.f32 %v4312_v17, %v2529_v34 }
 0x63a   : > { %v2583_v48 = vmul.f32 %v5418_v41, %v2568_v54 }
 0x63b   : > { %v2584_v31 = vmul.f32 %v5418_v41, %v2569_v2  ;;  %v2958_v41 = vld [vmem:[%s5672_s11 + $0x10] sm:$0xff] }
 0x63c   : > { %v2598_v42 = vadd.f32 %v3296_v35, %v2583_v48 }
 0x63d   : > { %v2599_v45 = vadd.f32 %v3296_v35, %v2584_v31  ;;  %v2959_v35 = vld [vmem:[%s5672_s11 + $0x18] sm:$0xff] }
 0x63e   : > { %3716 = vmatprep.mubr.msk.f32.mxu1 %vm449_vm0, %v2598_v42  ;;  %v3943_v39 = vpack.c.bf16 %v2959_v35, %v2958_v41 }
 0x63f   : > { %3717 = vmatmul.mubr.msk.f32.gmra.mrb[38].mxu1 %vm449_vm0, %v2599_v45 }
 0x640   : > { %3944 = vmatprep.subr.bf16.mxu0 %v3943_v39 }
 0x641   : > { %3946 = vmatpush3.bf16.msra.mxu0 %v3943_v39 }
 0x642   : > { %3948 = vmatprep.subr.bf16.mxu0 %v3947_v40 }
 0x645   : > { %3950 = vmatpush3.bf16.msra.mxu0 %v3947_v40 }
 0x646   : > { %3952 = vmatprep.subr.bf16.mxu0 %v3951_v26 }
 0x649   : > { %3954 = vmatpush3.bf16.msra.mxu0 %v3951_v26 }
 0x64a   : > { %3956 = vmatprep.subr.bf16.mxu0 %v3955_v19 }
 0x64d   : > { %3958 = vmatpush3.bf16.msra.mxu0 %v3955_v19 }
 0x64e   : > { %3960 = vmatprep.subr.bf16.mxu0 %v3959_v9 }
 0x651   : > { %3962 = vmatpush3.bf16.msra.mxu0 %v3959_v9 }
 0x652   : > { %3964 = vmatprep.subr.bf16.mxu0 %v3963_v60 }
 0x655   : > { %3966 = vmatpush3.bf16.msra.mxu0 %v3963_v60 }
 0x656   : > { %3968 = vmatprep.subr.bf16.mxu0 %v3967_v23 }
 0x659   : > { %3970 = vmatpush3.bf16.msra.mxu0 %v3967_v23 }
 0x6fa   : > { %v3709_v49 = vpop.f32.mrb[32].mxu1 }
 0x6fb   : > { %v2707_v55 = vadd.f32 %v3709_v49, %v3297_v38  ;;  %v2701_v11 = vpop.f32.mrb[33].mxu1 }
 0x6fc   : > { %v5503_v44 = vadd.f32 %v3297_v38, %v2701_v11 }
 0x6fd   : > { %v5505_v29 = vmul.f32 0.70710677, %v2707_v55  ;;  %v5550_v11 = vmul.f32 0.5, %v2707_v55 }
 0x6fe   : > { %v5508_v37 = vmul.f32 0.70710677, %v5503_v44 }
 0x6ff   : > { %v2757_v52 = vand.u32 2147483647, %v5505_v29  ;;  %vm2917_vm4 = vcmp.ge.f32.partialorder %v5505_v29, 0.0 }
 0x700   : > { %v2756_v3 = vand.u32 2147483647, %v5508_v37  ;;  %vm2916_vm5 = vcmp.ge.f32.partialorder %v5508_v37, 0.0 }
 0x701   : > { %v2765_v46 = vmul.f32 0.3275911, %v2757_v52  ;;  %v2869_v34 = vsub.f32 0.0, %v2757_v52 }
 0x702   : > { %v2764_v58 = vmul.f32 0.3275911, %v2756_v3  ;;  %v3712_v7 = vpop.f32.mrb[34].mxu1  ;;  %v2868_v45 = vsub.f32 0.0, %v2756_v3 }
 0x703   : > { %v2773_v62 = vadd.f32 1.0, %v2765_v46  ;;  %v5512_v53 = vadd.f32 %v3712_v7, %v3297_v38  ;;  %v2711_v57 = vpop.f32.mrb[35].mxu1  ;;  %v2877_v56 = vmul.f32 %v2869_v34, %v2757_v52 }
 0x704   : > { %v2772_v59 = vadd.f32 1.0, %v2764_v58  ;;  %v5514_v47 = vadd.f32 %v3297_v38, %v2711_v57  ;;  %v2876_v26 = vmul.f32 %v2868_v45, %v2756_v3 }
 0x705   : > { %4313 = vrcp.f32 %v2773_v62  ;;  %v5517_v51 = vmul.f32 0.70710677, %v5512_v53  ;;  %v2886_v19 = vmul.f32 1.442695, %v2877_v56 }
 0x706   : > { %4315 = vrcp.f32 %v2772_v59  ;;  %v5520_v0 = vmul.f32 0.70710677, %v5514_v47  ;;  %v2884_v3 = vmul.f32 1.442695, %v2876_v26  ;;  %v5562_v59 = vmul.f32 0.5, %v5503_v44 }
 0x707   : > { %v2759_v4 = vand.u32 2147483647, %v5517_v51  ;;  %vm2919_vm6 = vcmp.ge.f32.partialorder %v5517_v51, 0.0 }
 0x708   : > { %v2758_v63 = vand.u32 2147483647, %v5520_v0  ;;  %vm2918_vm7 = vcmp.ge.f32.partialorder %v5520_v0, 0.0 }
 0x709   : > { %v2767_v15 = vmul.f32 0.3275911, %v2759_v4  ;;  %v2871_v27 = vsub.f32 0.0, %v2759_v4 }
 0x70a   : > { %v2766_v30 = vmul.f32 0.3275911, %v2758_v63  ;;  %v3715_v6 = vpop.f32.mrb[36].mxu1  ;;  %v2870_v23 = vsub.f32 0.0, %v2758_v63 }
 0x70b   : > { %v2775_v17 = vadd.f32 1.0, %v2767_v15  ;;  %v5524_v54 = vadd.f32 %v3715_v6, %v3297_v38  ;;  %v2721_v2 = vpop.f32.mrb[37].mxu1  ;;  %v2879_v8 = vmul.f32 %v2871_v27, %v2759_v4 }
 0x70c   : > { %v2774_v48 = vadd.f32 1.0, %v2766_v30  ;;  %v5526_v31 = vadd.f32 %v3297_v38, %v2721_v2  ;;  %v2878_v30 = vmul.f32 %v2870_v23, %v2758_v63  ;;  %v5571_v63 = vmul.f32 0.5, %v5514_v47 }
 0x70d   : > { %4317 = vrcp.f32 %v2775_v17  ;;  %v5529_v42 = vmul.f32 0.70710677, %v5524_v54  ;;  %v2890_v15 = vmul.f32 1.442695, %v2879_v8 }
 0x70e   : > { %4319 = vrcp.f32 %v2774_v48  ;;  %v5532_v16 = vmul.f32 0.70710677, %v5526_v31  ;;  %v2888_v26 = vmul.f32 1.442695, %v2878_v30 }
 0x70f   : > { %v5534_v24 = vpop.eup %4313  ;;  %v2761_v41 = vand.u32 2147483647, %v5529_v42  ;;  %vm2921_vm8 = vcmp.ge.f32.partialorder %v5529_v42, 0.0 }
 0x710   : > { %v5537_v35 = vpop.eup %4315  ;;  %v2797_v39 = vmul.f32 1.0614054, %v5534_v24  ;;  %v2760_v32 = vand.u32 2147483647, %v5532_v16  ;;  %vm2920_vm9 = vcmp.ge.f32.partialorder %v5532_v16, 0.0 }
 0x711   : > { %v2769_v40 = vmul.f32 0.3275911, %v2761_v41  ;;  %v2796_v12 = vmul.f32 1.0614054, %v5537_v35  ;;  %v2873_v58 = vsub.f32 0.0, %v2761_v41 }
 0x712   : > { %v2805_v14 = vadd.f32 -1.4531521, %v2797_v39  ;;  %v2768_v43 = vmul.f32 0.3275911, %v2760_v32  ;;  %v3718_v50 = vpop.f32.mrb[38].mxu1  ;;  %v2872_v56 = vsub.f32 0.0, %v2760_v32 }
 0x713   : > { %v2777_v13 = vadd.f32 1.0, %v2769_v40  ;;  %v5542_v5 = vadd.f32 %v3718_v50, %v3297_v38  ;;  %v2731_v9 = vpop.f32.mrb[39].mxu1  ;;  %v2804_v10 = vadd.f32 -1.4531521, %v2796_v12  ;;  %v2881_v45 = vmul.f32 %v2873_v58, %v2761_v41 }
 0x714   : > { %v2813_v28 = vmul.f32 %v5534_v24, %v2805_v14  ;;  %v2776_v36 = vadd.f32 1.0, %v2768_v43  ;;  %v5545_v60 = vadd.f32 %v3297_v38, %v2731_v9 }
 0x715   : > { %4321 = vrcp.f32 %v2777_v13  ;;  %v5548_v49 = vmul.f32 0.70710677, %v5542_v5  ;;  %v2812_v55 = vmul.f32 %v5537_v35, %v2804_v10 }
 0x716   : > { %v2821_v52 = vadd.f32 1.4214138, %v2813_v28  ;;  %4323 = vrcp.f32 %v2776_v36  ;;  %v5556_v38 = vmul.f32 0.70710677, %v5545_v60  ;;  %v2894_v28 = vmul.f32 1.442695, %v2881_v45 }
 0x717   : > { %v5552_v46 = vpop.eup %4317  ;;  %4325 = vpow2.f32 %v2886_v19  ;;  %v2763_v7 = vand.u32 2147483647, %v5548_v49  ;;  %v2820_v2 = vadd.f32 1.4214138, %v2812_v55  ;;  %v2880_v36 = vmul.f32 %v2872_v56, %v2760_v32 }
 0x718   : > { %v5558_v62 = vpop.eup %4319  ;;  %v2829_v57 = vmul.f32 %v5534_v24, %v2821_v52  ;;  %v2799_v4 = vmul.f32 1.0614054, %v5552_v46  ;;  %v2762_v34 = vand.u32 2147483647, %v5556_v38  ;;  %4327 = vpow2.f32 %v2884_v3 }
 0x719   : > { %v2771_v6 = vmul.f32 0.3275911, %v2763_v7  ;;  %v2798_v48 = vmul.f32 1.0614054, %v5558_v62  ;;  %v2828_v40 = vmul.f32 %v5537_v35, %v2820_v2  ;;  %v2875_v10 = vsub.f32 0.0, %v2763_v7 }
 0x71a   : > { %v2837_v17 = vadd.f32 -0.28449672, %v2829_v57  ;;  %v2770_v27 = vmul.f32 0.3275911, %v2762_v34  ;;  %v2807_v14 = vadd.f32 -1.4531521, %v2799_v4 }
 0x71b   : > { %v2779_v39 = vadd.f32 1.0, %v2771_v6  ;;  %v2806_v12 = vadd.f32 -1.4531521, %v2798_v48  ;;  %v2836_v19 = vadd.f32 -0.28449672, %v2828_v40  ;;  %vm2923_vm10 = vcmp.ge.f32.partialorder %v5548_v49, 0.0 }
 0x71c   : > { %v2845_v44 = vmul.f32 %v5534_v24, %v2837_v17  ;;  %v2778_v43 = vadd.f32 1.0, %v2770_v27  ;;  %v2815_v41 = vmul.f32 %v5552_v46, %v2807_v14  ;;  %v2892_v6 = vmul.f32 1.442695, %v2880_v36  ;;  %v3306_v49 = vld [vmem:[%s5673_s12] ss:$0 sm:$0xff] }
 0x71d   : > { %4329 = vrcp.f32 %v2779_v39  ;;  %v2814_v13 = vmul.f32 %v5558_v62, %v2806_v12  ;;  %v2844_v23 = vmul.f32 %v5537_v35, %v2836_v19  ;;  %v2883_v27 = vmul.f32 %v2875_v10, %v2763_v7 }
 0x71e   : > { %v2853_v50 = vadd.f32 0.2548296, %v2845_v44  ;;  %4331 = vpow2.f32 %v2890_v15  ;;  %v2823_v58 = vadd.f32 1.4214138, %v2815_v41  ;;  %v2874_v15 = vsub.f32 0.0, %v2762_v34 }
 0x71f   : > { %v5575_v9 = vpop.eup %4321  ;;  %4333 = vrcp.f32 %v2778_v43  ;;  %v2822_v52 = vadd.f32 1.4214138, %v2814_v13  ;;  %v2852_v30 = vadd.f32 0.2548296, %v2844_v23  ;;  %v2898_v23 = vmul.f32 1.442695, %v2883_v27 }
 0x720   : > { %v5578_v8 = vpop.eup %4323  ;;  %v2861_v47 = vmul.f32 %v5534_v24, %v2853_v50  ;;  %4335 = vpow2.f32 %v2888_v26  ;;  %v2801_v55 = vmul.f32 1.0614054, %v5575_v9  ;;  %v2831_v24 = vmul.f32 %v5552_v46, %v2823_v58 }
 0x721   : > { %v4326_v3 = vpop.eup %4325  ;;  %v2800_v57 = vmul.f32 1.0614054, %v5578_v8  ;;  %v2830_v32 = vmul.f32 %v5558_v62, %v2822_v52  ;;  %4337 = vpow2.f32 %v2894_v28  ;;  %v2860_v56 = vmul.f32 %v5537_v35, %v2852_v30 }
 0x722   : > { %v2901_v4 = vmul.f32 %v4326_v3, %v2861_v47  ;;  %v2809_v2 = vadd.f32 -1.4531521, %v2801_v55  ;;  %v4328_v48 = vpop.eup %4327  ;;  %v2839_v44 = vadd.f32 -0.28449672, %v2831_v24  ;;  %v2882_v26 = vmul.f32 %v2874_v15, %v2762_v34 }
 0x723   : > { %v2808_v17 = vadd.f32 -1.4531521, %v2800_v57  ;;  %v2838_v39 = vadd.f32 -0.28449672, %v2830_v32  ;;  %v2900_v43 = vmul.f32 %v4328_v48, %v2860_v56  ;;  %4339 = vpow2.f32 %v2892_v6 }
 0x724   : > { %v2909_v45 = vsub.f32 1.0, %v2901_v4  ;;  %v2817_v12 = vmul.f32 %v5575_v9, %v2809_v2  ;;  %v2847_v13 = vmul.f32 %v5552_v46, %v2839_v44  ;;  %v2896_v57 = vmul.f32 1.442695, %v2882_v26 }
 0x725   : > { %v2816_v40 = vmul.f32 %v5578_v8, %v2808_v17  ;;  %v2846_v50 = vmul.f32 %v5558_v62, %v2838_v39  ;;  %v2908_v7 = vsub.f32 1.0, %v2900_v43  ;;  %4341 = vpow2.f32 %v2898_v23 }
 0x726   : > { %v2925_v14 = vsub.f32 0.0, %v2909_v45  ;;  %v2825_v28 = vadd.f32 1.4214138, %v2817_v12  ;;  %v2855_v34 = vadd.f32 0.2548296, %v2847_v13  ;;  %4343 = vpow2.f32 %v2896_v57 }
 0x727   : > { %v5591_v19 = vpop.eup %4329  ;;  %v2824_v41 = vadd.f32 1.4214138, %v2816_v40  ;;  %v2854_v36 = vadd.f32 0.2548296, %v2846_v50  ;;  %v2924_v55 = vsub.f32 0.0, %v2908_v7  ;;  %vm2922_vm11 = vcmp.ge.f32.partialorder %v5556_v38, 0.0 }
 0x728   : > { %v2933_v35 = vsel %vm2917_vm4, %v2909_v45, %v2925_v14  ;;  %v2803_v10 = vmul.f32 1.0614054, %v5591_v19  ;;  %v4332_v47 = vpop.eup %4331  ;;  %v2833_v3 = vmul.f32 %v5575_v9, %v2825_v28  ;;  %v2863_v32 = vmul.f32 %v5552_v46, %v2855_v34 }
 0x729   : > { %v2832_v52 = vmul.f32 %v5578_v8, %v2824_v41  ;;  %v5599_v58 = vpop.eup %4333  ;;  %v2862_v29 = vmul.f32 %v5558_v62, %v2854_v36  ;;  %v2941_v30 = vadd.f32 1.0, %v2933_v35  ;;  %v2932_v17 = vsel %vm2916_vm5, %v2908_v7, %v2924_v55 }
 0x72a   : > { %v2811_v4 = vadd.f32 -1.4531521, %v2803_v10  ;;  %v4336_v15 = vpop.eup %4335  ;;  %v2841_v24 = vadd.f32 -0.28449672, %v2833_v3  ;;  %v2802_v48 = vmul.f32 1.0614054, %v5599_v58  ;;  %v2903_v39 = vmul.f32 %v4332_v47, %v2863_v32 }
 0x72b   : > { %v2840_v6 = vadd.f32 -0.28449672, %v2832_v52  ;;  %v2902_v2 = vmul.f32 %v4336_v15, %v2862_v29  ;;  %v2940_v56 = vadd.f32 1.0, %v2932_v17  ;;  %v4338_v44 = vpop.eup %4337  ;;  %v2949_v50 = vmul.f32 %v2941_v30, %v5550_v11 }
 0x72c   : > { %v2819_v45 = vmul.f32 %v5591_v19, %v2811_v4  ;;  %v2849_v62 = vmul.f32 %v5575_v9, %v2841_v24  ;;  %v2810_v46 = vadd.f32 -1.4531521, %v2802_v48  ;;  %v2911_v37 = vsub.f32 1.0, %v2903_v39 }
 0x72d   : > { %v2848_v27 = vmul.f32 %v5578_v8, %v2840_v6  ;;  %v2910_v40 = vsub.f32 1.0, %v2902_v2  ;;  %v2948_v14 = vmul.f32 %v2940_v56, %v5562_v59  ;;  %v4340_v35 = vpop.eup %4339  ;;  %v2743_v55 = vmul.f32 0.5, %v5512_v53 }
 0x72e   : > { %v2827_v12 = vadd.f32 1.4214138, %v2819_v45  ;;  %v2857_v43 = vadd.f32 0.2548296, %v2849_v62  ;;  %v2818_v41 = vmul.f32 %v5599_v58, %v2810_v46  ;;  %v2927_v7 = vsub.f32 0.0, %v2911_v37 }
 0x72f   : > { %v2856_v26 = vadd.f32 0.2548296, %v2848_v27  ;;  %v2926_v13 = vsub.f32 0.0, %v2910_v40  ;;  %3751 = vmatprep.mubr.f32.mxu0 %v2948_v14  ;;  %v4342_v24 = vpop.eup %4341  ;;  %v2745_v62 = vmul.f32 0.5, %v5524_v54 }
 0x730   : > { %v2835_v28 = vmul.f32 %v5591_v19, %v2827_v12  ;;  %v2865_v10 = vmul.f32 %v5575_v9, %v2857_v43  ;;  %3752 = vmatmul.mubr.f32.vlgmr.msra.gmra.mrb[24].mxu0 %v2949_v50  ;;  %v2826_v47 = vadd.f32 1.4214138, %v2818_v41  ;;  %v2935_v34 = vsel %vm2919_vm6, %v2911_v37, %v2927_v7 }
 0x731   : > { %v2864_v36 = vmul.f32 %v5578_v8, %v2856_v26  ;;  %v2934_v59 = vsel %vm2918_vm7, %v2910_v40, %v2926_v13  ;;  %v2943_v0 = vadd.f32 1.0, %v2935_v34  ;;  %v2746_v43 = vmul.f32 0.5, %v5545_v60 }
 0x732   : > { %v2843_v23 = vadd.f32 -0.28449672, %v2835_v28  ;;  %v2942_v11 = vadd.f32 1.0, %v2934_v59  ;;  %v2905_v3 = vmul.f32 %v4338_v44, %v2865_v10  ;;  %v2834_v29 = vmul.f32 %v5599_v58, %v2826_v47  ;;  %v4344_v44 = vpop.eup %4343 }
 0x733   : > { %v2904_v52 = vmul.f32 %v4340_v35, %v2864_v36  ;;  %v2951_v15 = vmul.f32 %v2943_v0, %v2743_v55 }
 0x734   : > { %v2851_v8 = vmul.f32 %v5591_v19, %v2843_v23  ;;  %v2950_v9 = vmul.f32 %v2942_v11, %v5571_v63  ;;  %v2913_v4 = vsub.f32 1.0, %v2905_v3  ;;  %v2842_v30 = vadd.f32 -0.28449672, %v2834_v29 }
 0x735   : > { %v2912_v57 = vsub.f32 1.0, %v2904_v52  ;;  %v2744_v63 = vmul.f32 0.5, %v5526_v31 }
 0x736   : > { %v2859_v32 = vadd.f32 0.2548296, %v2851_v8  ;;  %3754 = vmatprep.mubr.f32.mxu0 %v2950_v9  ;;  %v2929_v51 = vsub.f32 0.0, %v2913_v4  ;;  %v2850_v53 = vmul.f32 %v5599_v58, %v2842_v30 }
 0x737   : > { %v2928_v6 = vsub.f32 0.0, %v2912_v57  ;;  %3755 = vmatmul.mubr.f32.gmra.mrb[26].mxu0 %v2951_v15 }
 0x738   : > { %v2867_v17 = vmul.f32 %v5591_v19, %v2859_v32  ;;  %v2937_v48 = vsel %vm2921_vm8, %v2913_v4, %v2929_v51  ;;  %v2858_v39 = vadd.f32 0.2548296, %v2850_v53 }
 0x739   : > { %v2936_v2 = vsel %vm2920_vm9, %v2912_v57, %v2928_v6  ;;  %v2945_v56 = vadd.f32 1.0, %v2937_v48 }
 0x73a   : > { %v2944_v45 = vadd.f32 1.0, %v2936_v2  ;;  %v2907_v27 = vmul.f32 %v4342_v24, %v2867_v17  ;;  %v2866_v42 = vmul.f32 %v5599_v58, %v2858_v39  ;;  %v2747_v58 = vmul.f32 0.5, %v5542_v5 }
 0x73b   : > { %v2953_v46 = vmul.f32 %v2945_v56, %v2745_v62 }
 0x73c   : > { %v2952_v40 = vmul.f32 %v2944_v45, %v2744_v63  ;;  %v2915_v16 = vsub.f32 1.0, %v2907_v27  ;;  %v2906_v12 = vmul.f32 %v4344_v44, %v2866_v42 }
 0x73e   : > { %3757 = vmatprep.mubr.f32.mxu0 %v2952_v40  ;;  %v2931_v14 = vsub.f32 0.0, %v2915_v16  ;;  %v2914_v31 = vsub.f32 1.0, %v2906_v12 }
 0x73f   : > { %3758 = vmatmul.mubr.f32.gmra.mrb[28].mxu0 %v2953_v46 }
 0x740   : > { %v2939_v19 = vsel %vm2923_vm10, %v2915_v16, %v2931_v14  ;;  %v2930_v37 = vsub.f32 0.0, %v2914_v31 }
 0x741   : > { %v2947_v54 = vadd.f32 1.0, %v2939_v19 }
 0x742   : > { %v2938_v26 = vsel %vm2922_vm11, %v2914_v31, %v2930_v37 }
 0x743   : > { %v2946_v50 = vadd.f32 1.0, %v2938_v26  ;;  %v2955_v41 = vmul.f32 %v2947_v54, %v2747_v58 }
 0x745   : > { %v2954_v13 = vmul.f32 %v2946_v50, %v2746_v43 }
 0x747   : > { %3760 = vmatprep.mubr.f32.mxu0 %v2954_v13 }
 0x748   : > { %3761 = vmatmul.mubr.f32.gmra.mrb[30].mxu0 %v2955_v41 }
 0x803   : > { %v3753_v28 = vpop.f32.mrb[24].mxu0 }
 0x804   : > { %v3051_v35 = vadd.f32 %v3753_v28, %v3306_v49  ;;  %v3045_v7 = vpop.f32.mrb[25].mxu0 }
 0x805   : > { %v3046_v60 = vadd.f32 %v3306_v49, %v3045_v7 }
 0x806   : > { %v3085_v38 = vadd.f32 %v3051_v35, %v5331_v21 }
 0x807   : > { %v3084_v5 = vadd.f32 %v3046_v60, %v5333_v61 }
 0x808   : > { %3093 = vst.msk [vmem:[%s440_s19 + $0x8] sm:$0xff] %vm449_vm0, %v3085_v38 }
 0x809   : > { %3092 = vst.msk [vmem:[%s440_s19] sm:$0xff] %vm449_vm0, %v3084_v5 }
 0x80a   : > { %v3756_v36 = vpop.f32.mrb[26].mxu0 }
 0x80b   : > { %v3061_v10 = vadd.f32 %v3756_v36, %v3306_v49  ;;  %v3055_v59 = vpop.f32.mrb[27].mxu0 }
 0x80c   : > { %v3056_v47 = vadd.f32 %v3306_v49, %v3055_v59 }
 0x80d   : > { %v3087_v23 = vadd.f32 %v3061_v10, %v5348_v25 }
 0x80e   : > { %v3086_v11 = vadd.f32 %v3056_v47, %v5346_v33 }
 0x80f   : > { %3095 = vst.msk [vmem:[%s440_s19 + $0x18] sm:$0xff] %vm449_vm0, %v3087_v23 }
 0x810   : > { %3094 = vst.msk [vmem:[%s440_s19 + $0x10] sm:$0xff] %vm449_vm0, %v3086_v11 }
 0x812   : > { %v3759_v34 = vpop.f32.mrb[28].mxu0 }
 0x813   : > { %v3071_v21 = vadd.f32 %v3759_v34, %v3306_v49  ;;  %v3065_v52 = vpop.f32.mrb[29].mxu0 }
 0x814   : > { %v3066_v61 = vadd.f32 %v3306_v49, %v3065_v52 }
 0x815   : > { %v3089_v3 = vadd.f32 %v3071_v21, %v5364_v18 }
 0x816   : > { %v3088_v55 = vadd.f32 %v3066_v61, %v5361_v20 }
 0x817   : > { %3097 = vst.msk [vmem:[%s440_s19 + $0x28] sm:$0xff] %vm449_vm0, %v3089_v3 }
 0x818   : > { %3096 = vst.msk [vmem:[%s440_s19 + $0x20] sm:$0xff] %vm449_vm0, %v3088_v55 }
 0x81b   : > { %v3762_v0 = vpop.f32.mrb[30].mxu0 }
 0x81c   : > { %v3081_v25 = vadd.f32 %v3762_v0, %v3306_v49  ;;  %v3075_v29 = vpop.f32.mrb[31].mxu0 }
 0x81d   : > { %v3076_v33 = vadd.f32 %v3306_v49, %v3075_v29 }
 0x81e   : > { %v3091_v8 = vadd.f32 %v3081_v25, %v5380_v1 }
 0x81f   : > { %v3090_v9 = vadd.f32 %v3076_v33, %v5377_v22 }
 0x820   : > { %3099 = vst.msk [vmem:[%s440_s19 + $0x38] sm:$0xff] %vm449_vm0, %v3091_v8 }
 0x821   : > { %3098 = vst.msk [vmem:[%s440_s19 + $0x30] sm:$0xff] %vm449_vm0, %v3090_v9 }
 0x822 PF: > { %s23_s25 = sadd.s32 1, %s4359_s25  }
 0x823   : > { %p20_p4 = scmp.ge.s32.totalorder %s23_s25, 4  }
 0x825   :  { %22 = sbr.rel (!%p20_p4) target bundleno = 1 (0x1), region = 105 }

</bundles_post_ra>
